<compile_context>
chip_gen: v5e
topology: v5e:2x2
jax: 0.10.0
libtpu: 0.0.40
codegen_flags: <defaults>
</compile_context>

<pallas_src>
import functools

import jax
import jax.numpy as jnp
from jax.experimental import pallas as pl
from jax.experimental.pallas import tpu as pltpu


def _fpn_block_kernel(x_ref, skip_e_ref, skip_o_ref, w_ref, b_ref, o_ref, *,
                      th, w_px):
    """One grid step = TH output rows of one image.

    x_ref:      (TH//2 * W, Cp)  pre-upsample x rows, channels on lanes
    skip_e_ref: (TH * W, Cs)     skip features of the even output columns
    skip_o_ref: (TH * W, Cs)     skip features of the odd  output columns
    w_ref:      (Cs, Cp)         1x1 conv weight as a matmul operand
    b_ref:      (1, Cp)          1x1 conv bias (f32)
    o_ref:      (TH * W, 2*Cp)   output rows, [even | odd] channel groups on lanes
    """
    _, cp = w_ref.shape
    m_out = th * w_px

    w = w_ref[...]
    b = b_ref[...].astype(jnp.float32)

    # 1x1 convolution on the skip features: two MXU matmuls, f32 accumulation.
    conv_e = jnp.dot(skip_e_ref[...], w, preferred_element_type=jnp.float32) + b
    conv_o = jnp.dot(skip_o_ref[...], w, preferred_element_type=jnp.float32) + b

    # Nearest 2x upsample of x along H: every input row feeds two consecutive
    # output rows (leading-dim broadcast + merge; free when W % 8 == 0).
    x = x_ref[...].astype(jnp.float32).reshape(th // 2, 1, w_px, cp)
    x_up = jnp.broadcast_to(x, (th // 2, 2, w_px, cp)).reshape(m_out, cp)

    # Nearest 2x upsample along W: x is identical for the even and the odd
    # output column of each pixel pair -> duplicate across the lane groups.
    out = jnp.concatenate([x_up + conv_e, x_up + conv_o], axis=-1)
    o_ref[...] = out.astype(o_ref.dtype)


def _pick_row_block(h2, w, cs, cp, in_bytes, out_bytes,
                    vmem_budget=12 * 1024 * 1024, target_rows=512):
    """Largest even TH dividing h2 whose (double-buffered) blocks fit VMEM."""
    th = 2
    for cand in range(2, h2 + 1, 2):
        if h2 % cand:
            continue
        m = cand * w
        blk = 2 * ((cand // 2) * w * cp * in_bytes      # x block
                   + 2 * m * cs * in_bytes              # skip even + odd blocks
                   + m * 2 * cp * out_bytes)            # output block
        if blk > vmem_budget:
            break
        th = cand
        if m >= target_rows:                            # MXU tile already large
            break
    return th


def fpn_block_forward_nhwc(x, skip, weight, bias, *, compute_dtype=jnp.bfloat16):
    """x: (N, H, W, Cp), skip: (N, 2H, 2W, Cs), weight: (Cp, Cs, 1, 1), bias: (Cp,).

    Returns (N, 2H, 2W, Cp) in x.dtype.  Keep the FPN decoder NHWC end-to-end
    and call this directly to avoid layout transposes around every block.
    """
    n, h, w, cp = x.shape
    _, h2, w2, cs = skip.shape
    assert h2 == 2 * h and w2 == 2 * w
    assert w % 8 == 0, "W must be a multiple of 8 (TPU sublane tiling)"
    # TODO(synk): support W % 8 != 0 (needs padded tiles for the row-block reshapes).

    out_dtype = x.dtype
    in_bytes = jnp.dtype(compute_dtype).itemsize
    out_bytes = jnp.dtype(out_dtype).itemsize

    # 1x1-conv parameters as matmul operands (channels-last).
    wmat = jnp.transpose(weight[:, :, 0, 0], (1, 0)).astype(compute_dtype)  # (Cs, Cp)
    bvec = bias.reshape(1, cp).astype(jnp.float32)

    # Free reshapes: flatten (N, H, W) onto the row axis; group each (even, odd)
    # output-column pair of skip so the kernel sees two dense (rows, Cs) blocks.
    x2 = x.reshape(n * h * w, cp).astype(compute_dtype)
    skip4 = skip.reshape(n * h2 * w, 2, 1, cs).astype(compute_dtype)

    th = _pick_row_block(h2, w, cs, cp, in_bytes, out_bytes)
    m_in = (th // 2) * w
    m_out = th * w
    grid = (n * h2 // th,)

    kernel = functools.partial(_fpn_block_kernel, th=th, w_px=w)

    out2 = pl.pallas_call(
        kernel,
        out_shape=jax.ShapeDtypeStruct((n * h2 * w, 2 * cp), out_dtype),
        grid_spec=pltpu.PrefetchScalarGridSpec(
            num_scalar_prefetch=0,
            grid=grid,
            in_specs=[
                pl.BlockSpec((m_in, cp), lambda g: (g, 0)),
                pl.BlockSpec((m_out, None, None, cs), lambda g: (g, 0, 0, 0)),
                pl.BlockSpec((m_out, None, None, cs), lambda g: (g, 1, 0, 0)),
                pl.BlockSpec((cs, cp), lambda g: (0, 0)),
                pl.BlockSpec((1, cp), lambda g: (0, 0)),
            ],
            out_specs=pl.BlockSpec((m_out, 2 * cp), lambda g: (g, 0)),
        ),
        compiler_params=pltpu.CompilerParams(
            dimension_semantics=("parallel",)),
    )(x2, skip4, skip4, wmat, bvec)

    # Undo the lane grouping (free reshapes): (..., W, [even|odd], Cp) -> (..., 2W, Cp).
    return out2.reshape(n, h2, w, 2, cp).reshape(n, h2, w2, cp)


def fpn_block_forward(x_nchw, skip_nchw, weight, bias, *,
                      compute_dtype=jnp.bfloat16):
    """NCHW wrapper matching the PyTorch module boundary.

    NOTE: each transpose here is a full HBM pass; in a real decoder keep
    activations NHWC end-to-end and call fpn_block_forward_nhwc directly.
    """
    x = jnp.transpose(x_nchw, (0, 2, 3, 1))
    skip = jnp.transpose(skip_nchw, (0, 2, 3, 1))
    out = fpn_block_forward_nhwc(x, skip, weight, bias,
                                 compute_dtype=compute_dtype)
    return jnp.transpose(out, (0, 3, 1, 2))


def fpn_block_ref(x_nchw, skip_nchw, weight, bias):
    """Pure-JAX reference (matches PyTorch semantics)."""
    x_up = jnp.repeat(jnp.repeat(x_nchw, 2, axis=2), 2, axis=3)
    conv = jnp.einsum('oc,nchw->nohw', weight[:, :, 0, 0], skip_nchw)
    return x_up + conv + bias[None, :, None, None]


if __name__ == "__main__":
    key = jax.random.PRNGKey(0)
    k1, k2, k3, k4 = jax.random.split(key, 4)

    # Small shapes: pyramid_channels=8, skip_channels=4, x spatial 8x8 (skip 16x16).
    N, Cp, Cs, H, W = 2, 8, 4, 8, 8
    x = jax.random.normal(k1, (N, Cp, H, W), jnp.float32)
    skip = jax.random.normal(k2, (N, Cs, 2 * H, 2 * W), jnp.float32)
    weight = 0.1 * jax.random.normal(k3, (Cp, Cs, 1, 1), jnp.float32)
    bias = 0.1 * jax.random.normal(k4, (Cp,), jnp.float32)

    ref = fpn_block_ref(x, skip, weight, bias)

    # Exactness check with f32 compute.
    out_f32 = jax.block_until_ready(
        fpn_block_forward(x, skip, weight, bias, compute_dtype=jnp.float32))
    assert out_f32.shape == (N, Cp, 2 * H, 2 * W), out_f32.shape
    err32 = float(jnp.max(jnp.abs(out_f32 - ref)))
    assert jnp.allclose(out_f32, ref, atol=1e-5, rtol=1e-5), err32

    # Fast path: bf16 streaming inputs / MXU matmul, f32 accumulate and add.
    out_bf16 = jax.block_until_ready(
        fpn_block_forward(x, skip, weight, bias, compute_dtype=jnp.bfloat16))
    err16 = float(jnp.max(jnp.abs(out_bf16 - ref)))
    assert jnp.allclose(out_bf16, ref, atol=1e-1, rtol=5e-2), err16

    print("KERNEL_OK")
</pallas_src>

<mosaic_0001>
module attributes {stable_mosaic.version = 11 : i64} {
  func.func @_fpn_block_kernel(%arg0: i32, %arg1: memref<64x8xf32, #tpu.memory_space<vmem>>, %arg2: memref<128x1x1x4xf32, #tpu.memory_space<vmem>>, %arg3: memref<128x1x1x4xf32, #tpu.memory_space<vmem>>, %arg4: memref<4x8xf32, #tpu.memory_space<vmem>>, %arg5: memref<1x8xf32, #tpu.memory_space<vmem>>, %arg6: memref<128x16xf32, #tpu.memory_space<vmem>>) attributes {dimension_semantics = [#tpu.dimension_semantics<parallel>], iteration_bounds = array<i64: 2>, scalar_prefetch = 0 : i64, scratch_operands = 0 : i64, tpu.core_type = #tpu.core_type<tc>, window_params = [{transform_indices = @transform_0, window_bounds = array<i64: 64, 8>}, {transform_indices = @transform_1, window_bounds = array<i64: 128, 1, 1, 4>}, {transform_indices = @transform_2, window_bounds = array<i64: 128, 1, 1, 4>}, {pipeline_mode = #tpu.pipeline_mode<synchronous>, transform_indices = @transform_3, window_bounds = array<i64: 4, 8>}, {pipeline_mode = #tpu.pipeline_mode<synchronous>, transform_indices = @transform_4, window_bounds = array<i64: 1, 8>}, {transform_indices = @transform_5, window_bounds = array<i64: 128, 16>}]} {
    %c0 = arith.constant 0 : index
    %c0_0 = arith.constant 0 : index
    %0 = vector.load %arg4[%c0, %c0_0] : memref<4x8xf32, #tpu.memory_space<vmem>>, vector<4x8xf32>
    %c0_1 = arith.constant 0 : index
    %c0_2 = arith.constant 0 : index
    %1 = vector.load %arg5[%c0_1, %c0_2] : memref<1x8xf32, #tpu.memory_space<vmem>>, vector<1x8xf32>
    %c0_3 = arith.constant 0 : index
    %c0_4 = arith.constant 0 : index
    %c0_5 = arith.constant 0 : index
    %c0_6 = arith.constant 0 : index
    %2 = vector.load %arg2[%c0_3, %c0_4, %c0_5, %c0_6] : memref<128x1x1x4xf32, #tpu.memory_space<vmem>>, vector<128x1x1x4xf32>
    %3 = vector.shape_cast %2 : vector<128x1x1x4xf32> to vector<128x4xf32>
    %cst = arith.constant dense<0.000000e+00> : vector<128x8xf32>
    %4 = tpu.matmul %3, %0, %cst {dimension_numbers = #tpu.dot_dimension_numbers<[1], [0], [0], [1], [0, 0, 1, 1], [], []>} : vector<128x4xf32>, vector<4x8xf32>, vector<128x8xf32> -> vector<128x8xf32>
    %5 = vector.broadcast %1 : vector<1x8xf32> to vector<128x8xf32>
    %6 = arith.addf %4, %5 : vector<128x8xf32>
    %c0_7 = arith.constant 0 : index
    %c0_8 = arith.constant 0 : index
    %c0_9 = arith.constant 0 : index
    %c0_10 = arith.constant 0 : index
    %7 = vector.load %arg3[%c0_7, %c0_8, %c0_9, %c0_10] : memref<128x1x1x4xf32, #tpu.memory_space<vmem>>, vector<128x1x1x4xf32>
    %8 = vector.shape_cast %7 : vector<128x1x1x4xf32> to vector<128x4xf32>
    %cst_11 = arith.constant dense<0.000000e+00> : vector<128x8xf32>
    %9 = tpu.matmul %8, %0, %cst_11 {dimension_numbers = #tpu.dot_dimension_numbers<[1], [0], [0], [1], [0, 0, 1, 1], [], []>} : vector<128x4xf32>, vector<4x8xf32>, vector<128x8xf32> -> vector<128x8xf32>
    %10 = vector.broadcast %1 : vector<1x8xf32> to vector<128x8xf32>
    %11 = arith.addf %9, %10 : vector<128x8xf32>
    %c0_12 = arith.constant 0 : index
    %c0_13 = arith.constant 0 : index
    %12 = vector.load %arg1[%c0_12, %c0_13] : memref<64x8xf32, #tpu.memory_space<vmem>>, vector<64x8xf32>
    %13 = vector.shape_cast %12 : vector<64x8xf32> to vector<8x1x8x8xf32>
    %14 = vector.shape_cast %13 : vector<8x1x8x8xf32> to vector<8x1x8x8xf32>
    %15 = vector.broadcast %14 : vector<8x1x8x8xf32> to vector<8x2x8x8xf32>
    %16 = vector.shape_cast %15 : vector<8x2x8x8xf32> to vector<128x8xf32>
    %17 = arith.addf %16, %6 : vector<128x8xf32>
    %18 = arith.addf %16, %11 : vector<128x8xf32>
    %19 = tpu.concatenate %17, %18 in 1 : vector<128x8xf32>, vector<128x8xf32> -> vector<128x16xf32>
    %c0_14 = arith.constant 0 : index
    %c0_15 = arith.constant 0 : index
    %20 = vector.load %arg6[%c0_14, %c0_15] : memref<128x16xf32, #tpu.memory_space<vmem>>, vector<128x16xf32>
    tpu.vector_store %arg6[%c0_14, %c0_15], %19 {strides = array<i32>} : memref<128x16xf32, #tpu.memory_space<vmem>>, vector<128x16xf32>,
    return
  }
  func.func @transform_0(%arg0: i32) -> (i32, i32) {
    %c0_i32 = arith.constant 0 : i32
    %c0_i32_0 = arith.constant 0 : i32
    return %arg0, %c0_i32 : i32, i32
  }
  func.func @transform_1(%arg0: i32) -> (i32, i32, i32, i32) {
    %c0_i32 = arith.constant 0 : i32
    %c0_i32_0 = arith.constant 0 : i32
    %c0_i32_1 = arith.constant 0 : i32
    %c0_i32_2 = arith.constant 0 : i32
    return %arg0, %c0_i32, %c0_i32_0, %c0_i32_1 : i32, i32, i32, i32
  }
  func.func @transform_2(%arg0: i32) -> (i32, i32, i32, i32) {
    %c1_i32 = arith.constant 1 : i32
    %c0_i32 = arith.constant 0 : i32
    %c0_i32_0 = arith.constant 0 : i32
    %c0_i32_1 = arith.constant 0 : i32
    return %arg0, %c1_i32, %c0_i32, %c0_i32_0 : i32, i32, i32, i32
  }
  func.func @transform_3(%arg0: i32) -> (i32, i32) {
    %c0_i32 = arith.constant 0 : i32
    %c0_i32_0 = arith.constant 0 : i32
    %c0_i32_1 = arith.constant 0 : i32
    return %c0_i32, %c0_i32_0 : i32, i32
  }
  func.func @transform_4(%arg0: i32) -> (i32, i32) {
    %c0_i32 = arith.constant 0 : i32
    %c0_i32_0 = arith.constant 0 : i32
    %c0_i32_1 = arith.constant 0 : i32
    return %c0_i32, %c0_i32_0 : i32, i32
  }
  func.func @transform_5(%arg0: i32) -> (i32, i32) {
    %c0_i32 = arith.constant 0 : i32
    %c0_i32_0 = arith.constant 0 : i32
    return %arg0, %c0_i32 : i32, i32
  }
}

</mosaic_0001>

<bundles_post_ra>
// kernel: tpu_custom_call.1
= control target key start
LH: loop header
LB: loop body
LE: loop exit
PB: predicated region body
PF: predicated region fallthrough
CT: control target
= control target key end

     0   :  { %s2888_s18 = smov 0   ;;  %s2890_s19 = smov 0   ;;  %s3977_s0 = inlined_call_operand.vmem [shape: f32[128,8], index: 0, kind: input, shape index: {}]   ;;  %s3978_s1 = inlined_call_operand.vmem [shape: f32[256,2,1,4], index: 1, kind: input, shape index: {}]   ;;  %s3979_s2 = inlined_call_operand.vmem [shape: f32[256,2,1,4], index: 2, kind: input, shape index: {}]   ;;  %s3980_s3 = inlined_call_operand.vmem [shape: f32[4,8], index: 3, kind: input, shape index: {}]   ;;  %s3981_s4 = inlined_call_operand.vmem [shape: f32[1,8], index: 4, kind: input, shape index: {}]   ;;  %s3982_s5 = inlined_call_operand.vmem [shape: f32[256,16], index: 5, kind: output, shape index: {}]  }
   0x1   :  { %s2892_s20 = smov 0  }
   0x2 LB: > { %s2624_s21 = sadd.s32 4294967295, %s2855_s20   ;;  %s2905_s22 = sadd.s32 1, %s2855_s20   ;;  %s2855_s20 = sphi %s2892_s20, %s3986_s20   ;;  %s2851_s19 = sphi %s2890_s19, %s3985_s19   ;;  %s2847_s18 = sphi %s2888_s18, %s3984_s18  }
   0x3   : > { %s45_s23 = ssub.s32 %s2855_s20, %s2905_s22  ;;  %s48_s24 = sadd.s32 1, %s2851_s19 }
   0x4   : > { %p46_p0 = scmp.eq.s32.totalorder %s45_s23, 0  ;;  %p55_p1 = scmp.ne.s32.totalorder %s2851_s19, %s2847_s18 }
   0x5   : > { %p56_p2 = scmp.eq.s32.totalorder %s2855_s20, 0  ;;  %p2627_p4 = scmp.ge.s32.totalorder %s2855_s20, 2 }
   0x6   : > { %s2914_s25 = scalar_select %p46_p0, %s2851_s19, %s48_s24  }
   0x7   : > { %p2916_p3 = por %p56_p2, %p55_p1  ;;  %181 = sbr.rel (%p2627_p4) target bundleno = 276 (0x114), region = 24 }
   0xc   : > { %193 = sbr.rel (!%p2916_p3) target bundleno = 144 (0x90), region = 32  ;;  %s195_s27 = sand.u32 (%p2916_p3), 1, %s2851_s19  }
   0xd   : > { %s2804_s28 = sshll.u32 (%p2916_p3), %s2855_s20, 8  ;;  %s2628_s29 = sshll.u32 (%p2916_p3), %s195_s27, 7 }
   0xe   : > { %s2928_s7 = scalar_lea.vmem (%p2916_p3), %s3978_s1, %s2804_s28  ;;  %s2932_s8 = scalar_lea.vmem (%p2916_p3), [#allocation2], %s2628_s29 }
   0xf   : > { %v217_v0 = vld [vmem:[%s2928_s7] sm:$0x1] (%p2916_p3)  ;;  %v219_v1 = vld [vmem:[%s2928_s7 + $0x2] sm:$0x1] (%p2916_p3)  ;;  %v221_v2 = vld [vmem:[%s2928_s7 + $0x4] sm:$0x1] (%p2916_p3) }
  0x10   : > { %218 = vst [vmem:[%s2932_s8] sm:$0x1] (%p2916_p3), %v217_v0  ;;  %v223_v3 = vld [vmem:[%s2928_s7 + $0x6] sm:$0x1] (%p2916_p3)  ;;  %v225_v4 = vld [vmem:[%s2928_s7 + $0x8] sm:$0x1] (%p2916_p3) }
  0x11   : > { %220 = vst [vmem:[%s2932_s8 + $0x1] sm:$0x1] %v219_v1  ;;  %v227_v5 = vld [vmem:[%s2928_s7 + $0xa] sm:$0x1]  ;;  %v229_v6 = vld [vmem:[%s2928_s7 + $0xc] sm:$0x1] }
  0x12   : > { %222 = vst [vmem:[%s2932_s8 + $0x2] sm:$0x1] %v221_v2  ;;  %v231_v7 = vld [vmem:[%s2928_s7 + $0xe] sm:$0x1]  ;;  %v233_v8 = vld [vmem:[%s2928_s7 + $0x10] sm:$0x1] }
  0x13   : > { %224 = vst [vmem:[%s2932_s8 + $0x3] sm:$0x1] %v223_v3  ;;  %v235_v9 = vld [vmem:[%s2928_s7 + $0x12] sm:$0x1]  ;;  %v237_v10 = vld [vmem:[%s2928_s7 + $0x14] sm:$0x1] }
  0x14   : > { %226 = vst [vmem:[%s2932_s8 + $0x4] sm:$0x1] %v225_v4  ;;  %v239_v11 = vld [vmem:[%s2928_s7 + $0x16] sm:$0x1]  ;;  %v241_v12 = vld [vmem:[%s2928_s7 + $0x18] sm:$0x1] }
  0x15   : > { %228 = vst [vmem:[%s2932_s8 + $0x5] sm:$0x1] %v227_v5  ;;  %v243_v13 = vld [vmem:[%s2928_s7 + $0x1a] sm:$0x1]  ;;  %v245_v14 = vld [vmem:[%s2928_s7 + $0x1c] sm:$0x1] }
  0x16   : > { %230 = vst [vmem:[%s2932_s8 + $0x6] sm:$0x1] %v229_v6  ;;  %v247_v15 = vld [vmem:[%s2928_s7 + $0x1e] sm:$0x1]  ;;  %v249_v16 = vld [vmem:[%s2928_s7 + $0x20] sm:$0x1] }
  0x17   : > { %232 = vst [vmem:[%s2932_s8 + $0x7] sm:$0x1] %v231_v7  ;;  %v251_v17 = vld [vmem:[%s2928_s7 + $0x22] sm:$0x1]  ;;  %v253_v18 = vld [vmem:[%s2928_s7 + $0x24] sm:$0x1] }
  0x18   : > { %234 = vst [vmem:[%s2932_s8 + $0x8] sm:$0x1] %v233_v8  ;;  %v255_v19 = vld [vmem:[%s2928_s7 + $0x26] sm:$0x1]  ;;  %v257_v20 = vld [vmem:[%s2928_s7 + $0x28] sm:$0x1] }
  0x19   : > { %236 = vst [vmem:[%s2932_s8 + $0x9] sm:$0x1] %v235_v9  ;;  %v259_v21 = vld [vmem:[%s2928_s7 + $0x2a] sm:$0x1]  ;;  %v261_v22 = vld [vmem:[%s2928_s7 + $0x2c] sm:$0x1] }
  0x1a   : > { %238 = vst [vmem:[%s2932_s8 + $0xa] sm:$0x1] %v237_v10  ;;  %v263_v23 = vld [vmem:[%s2928_s7 + $0x2e] sm:$0x1]  ;;  %v265_v24 = vld [vmem:[%s2928_s7 + $0x30] sm:$0x1] }
  0x1b   : > { %240 = vst [vmem:[%s2932_s8 + $0xb] sm:$0x1] %v239_v11  ;;  %v267_v25 = vld [vmem:[%s2928_s7 + $0x32] sm:$0x1]  ;;  %v269_v26 = vld [vmem:[%s2928_s7 + $0x34] sm:$0x1] }
  0x1c   : > { %242 = vst [vmem:[%s2932_s8 + $0xc] sm:$0x1] %v241_v12  ;;  %v271_v27 = vld [vmem:[%s2928_s7 + $0x36] sm:$0x1]  ;;  %v273_v28 = vld [vmem:[%s2928_s7 + $0x38] sm:$0x1] }
  0x1d   : > { %244 = vst [vmem:[%s2932_s8 + $0xd] sm:$0x1] %v243_v13  ;;  %v275_v29 = vld [vmem:[%s2928_s7 + $0x3a] sm:$0x1]  ;;  %v277_v30 = vld [vmem:[%s2928_s7 + $0x3c] sm:$0x1] }
  0x1e   : > { %246 = vst [vmem:[%s2932_s8 + $0xe] sm:$0x1] %v245_v14  ;;  %v279_v31 = vld [vmem:[%s2928_s7 + $0x3e] sm:$0x1]  ;;  %v281_v32 = vld [vmem:[%s2928_s7 + $0x40] sm:$0x1] }
  0x1f   : > { %248 = vst [vmem:[%s2932_s8 + $0xf] sm:$0x1] %v247_v15  ;;  %v283_v33 = vld [vmem:[%s2928_s7 + $0x42] sm:$0x1]  ;;  %v285_v34 = vld [vmem:[%s2928_s7 + $0x44] sm:$0x1] }
  0x20   : > { %250 = vst [vmem:[%s2932_s8 + $0x10] sm:$0x1] %v249_v16  ;;  %v287_v35 = vld [vmem:[%s2928_s7 + $0x46] sm:$0x1]  ;;  %v289_v36 = vld [vmem:[%s2928_s7 + $0x48] sm:$0x1] }
  0x21   : > { %252 = vst [vmem:[%s2932_s8 + $0x11] sm:$0x1] %v251_v17  ;;  %v291_v37 = vld [vmem:[%s2928_s7 + $0x4a] sm:$0x1]  ;;  %v293_v38 = vld [vmem:[%s2928_s7 + $0x4c] sm:$0x1] }
  0x22   : > { %254 = vst [vmem:[%s2932_s8 + $0x12] sm:$0x1] %v253_v18  ;;  %v295_v39 = vld [vmem:[%s2928_s7 + $0x4e] sm:$0x1]  ;;  %v297_v40 = vld [vmem:[%s2928_s7 + $0x50] sm:$0x1] }
  0x23   : > { %256 = vst [vmem:[%s2932_s8 + $0x13] sm:$0x1] %v255_v19  ;;  %v299_v41 = vld [vmem:[%s2928_s7 + $0x52] sm:$0x1]  ;;  %v301_v42 = vld [vmem:[%s2928_s7 + $0x54] sm:$0x1] }
  0x24   : > { %258 = vst [vmem:[%s2932_s8 + $0x14] sm:$0x1] %v257_v20  ;;  %v303_v43 = vld [vmem:[%s2928_s7 + $0x56] sm:$0x1]  ;;  %v305_v44 = vld [vmem:[%s2928_s7 + $0x58] sm:$0x1] }
  0x25   : > { %260 = vst [vmem:[%s2932_s8 + $0x15] sm:$0x1] %v259_v21  ;;  %v307_v45 = vld [vmem:[%s2928_s7 + $0x5a] sm:$0x1]  ;;  %v309_v46 = vld [vmem:[%s2928_s7 + $0x5c] sm:$0x1] }
  0x26   : > { %262 = vst [vmem:[%s2932_s8 + $0x16] sm:$0x1] %v261_v22  ;;  %v311_v47 = vld [vmem:[%s2928_s7 + $0x5e] sm:$0x1]  ;;  %v313_v48 = vld [vmem:[%s2928_s7 + $0x60] sm:$0x1] }
  0x27   : > { %264 = vst [vmem:[%s2932_s8 + $0x17] sm:$0x1] %v263_v23  ;;  %v315_v49 = vld [vmem:[%s2928_s7 + $0x62] sm:$0x1]  ;;  %v317_v50 = vld [vmem:[%s2928_s7 + $0x64] sm:$0x1] }
  0x28   : > { %266 = vst [vmem:[%s2932_s8 + $0x18] sm:$0x1] %v265_v24  ;;  %v319_v51 = vld [vmem:[%s2928_s7 + $0x66] sm:$0x1]  ;;  %v321_v52 = vld [vmem:[%s2928_s7 + $0x68] sm:$0x1] }
  0x29   : > { %268 = vst [vmem:[%s2932_s8 + $0x19] sm:$0x1] %v267_v25  ;;  %v323_v53 = vld [vmem:[%s2928_s7 + $0x6a] sm:$0x1]  ;;  %v325_v54 = vld [vmem:[%s2928_s7 + $0x6c] sm:$0x1] }
  0x2a   : > { %270 = vst [vmem:[%s2932_s8 + $0x1a] sm:$0x1] %v269_v26  ;;  %v327_v55 = vld [vmem:[%s2928_s7 + $0x6e] sm:$0x1]  ;;  %v329_v56 = vld [vmem:[%s2928_s7 + $0x70] sm:$0x1] }
  0x2b   : > { %272 = vst [vmem:[%s2932_s8 + $0x1b] sm:$0x1] %v271_v27  ;;  %v331_v57 = vld [vmem:[%s2928_s7 + $0x72] sm:$0x1]  ;;  %v333_v58 = vld [vmem:[%s2928_s7 + $0x74] sm:$0x1] }
  0x2c   : > { %274 = vst [vmem:[%s2932_s8 + $0x1c] sm:$0x1] %v273_v28  ;;  %v335_v59 = vld [vmem:[%s2928_s7 + $0x76] sm:$0x1]  ;;  %v337_v60 = vld [vmem:[%s2928_s7 + $0x78] sm:$0x1] }
  0x2d   : > { %276 = vst [vmem:[%s2932_s8 + $0x1d] sm:$0x1] %v275_v29  ;;  %v339_v61 = vld [vmem:[%s2928_s7 + $0x7a] sm:$0x1]  ;;  %v341_v62 = vld [vmem:[%s2928_s7 + $0x7c] sm:$0x1] }
  0x2e   : > { %278 = vst [vmem:[%s2932_s8 + $0x1e] sm:$0x1] %v277_v30  ;;  %v343_v63 = vld [vmem:[%s2928_s7 + $0x7e] sm:$0x1]  ;;  %v345_v0 = vld [vmem:[%s2928_s7 + $0x80] sm:$0x1] }
  0x2f   : > { %280 = vst [vmem:[%s2932_s8 + $0x1f] sm:$0x1] %v279_v31  ;;  %v347_v1 = vld [vmem:[%s2928_s7 + $0x82] sm:$0x1]  ;;  %v349_v2 = vld [vmem:[%s2928_s7 + $0x84] sm:$0x1] }
  0x30   : > { %282 = vst [vmem:[%s2932_s8 + $0x20] sm:$0x1] %v281_v32  ;;  %v351_v3 = vld [vmem:[%s2928_s7 + $0x86] sm:$0x1]  ;;  %v353_v4 = vld [vmem:[%s2928_s7 + $0x88] sm:$0x1] }
  0x31   : > { %284 = vst [vmem:[%s2932_s8 + $0x21] sm:$0x1] %v283_v33  ;;  %v355_v5 = vld [vmem:[%s2928_s7 + $0x8a] sm:$0x1]  ;;  %v357_v6 = vld [vmem:[%s2928_s7 + $0x8c] sm:$0x1] }
  0x32   : > { %286 = vst [vmem:[%s2932_s8 + $0x22] sm:$0x1] %v285_v34  ;;  %v359_v7 = vld [vmem:[%s2928_s7 + $0x8e] sm:$0x1]  ;;  %v361_v8 = vld [vmem:[%s2928_s7 + $0x90] sm:$0x1] }
  0x33   : > { %288 = vst [vmem:[%s2932_s8 + $0x23] sm:$0x1] %v287_v35  ;;  %v363_v9 = vld [vmem:[%s2928_s7 + $0x92] sm:$0x1]  ;;  %v365_v10 = vld [vmem:[%s2928_s7 + $0x94] sm:$0x1] }
  0x34   : > { %290 = vst [vmem:[%s2932_s8 + $0x24] sm:$0x1] %v289_v36  ;;  %v367_v11 = vld [vmem:[%s2928_s7 + $0x96] sm:$0x1]  ;;  %v369_v12 = vld [vmem:[%s2928_s7 + $0x98] sm:$0x1] }
  0x35   : > { %292 = vst [vmem:[%s2932_s8 + $0x25] sm:$0x1] %v291_v37  ;;  %v371_v13 = vld [vmem:[%s2928_s7 + $0x9a] sm:$0x1]  ;;  %v373_v14 = vld [vmem:[%s2928_s7 + $0x9c] sm:$0x1] }
  0x36   : > { %294 = vst [vmem:[%s2932_s8 + $0x26] sm:$0x1] %v293_v38  ;;  %v375_v15 = vld [vmem:[%s2928_s7 + $0x9e] sm:$0x1]  ;;  %v377_v16 = vld [vmem:[%s2928_s7 + $0xa0] sm:$0x1] }
  0x37   : > { %296 = vst [vmem:[%s2932_s8 + $0x27] sm:$0x1] %v295_v39  ;;  %v379_v17 = vld [vmem:[%s2928_s7 + $0xa2] sm:$0x1]  ;;  %v381_v18 = vld [vmem:[%s2928_s7 + $0xa4] sm:$0x1] }
  0x38   : > { %298 = vst [vmem:[%s2932_s8 + $0x28] sm:$0x1] %v297_v40  ;;  %v383_v19 = vld [vmem:[%s2928_s7 + $0xa6] sm:$0x1]  ;;  %v385_v20 = vld [vmem:[%s2928_s7 + $0xa8] sm:$0x1] }
  0x39   : > { %300 = vst [vmem:[%s2932_s8 + $0x29] sm:$0x1] %v299_v41  ;;  %v387_v21 = vld [vmem:[%s2928_s7 + $0xaa] sm:$0x1]  ;;  %v389_v22 = vld [vmem:[%s2928_s7 + $0xac] sm:$0x1] }
  0x3a   : > { %302 = vst [vmem:[%s2932_s8 + $0x2a] sm:$0x1] %v301_v42  ;;  %v391_v23 = vld [vmem:[%s2928_s7 + $0xae] sm:$0x1]  ;;  %v393_v24 = vld [vmem:[%s2928_s7 + $0xb0] sm:$0x1] }
  0x3b   : > { %304 = vst [vmem:[%s2932_s8 + $0x2b] sm:$0x1] %v303_v43  ;;  %v395_v25 = vld [vmem:[%s2928_s7 + $0xb2] sm:$0x1]  ;;  %v397_v26 = vld [vmem:[%s2928_s7 + $0xb4] sm:$0x1] }
  0x3c   : > { %306 = vst [vmem:[%s2932_s8 + $0x2c] sm:$0x1] %v305_v44  ;;  %v399_v27 = vld [vmem:[%s2928_s7 + $0xb6] sm:$0x1]  ;;  %v401_v28 = vld [vmem:[%s2928_s7 + $0xb8] sm:$0x1] }
  0x3d   : > { %308 = vst [vmem:[%s2932_s8 + $0x2d] sm:$0x1] %v307_v45  ;;  %v403_v29 = vld [vmem:[%s2928_s7 + $0xba] sm:$0x1]  ;;  %v405_v30 = vld [vmem:[%s2928_s7 + $0xbc] sm:$0x1] }
  0x3e   : > { %310 = vst [vmem:[%s2932_s8 + $0x2e] sm:$0x1] %v309_v46  ;;  %v407_v31 = vld [vmem:[%s2928_s7 + $0xbe] sm:$0x1]  ;;  %v409_v32 = vld [vmem:[%s2928_s7 + $0xc0] sm:$0x1] }
  0x3f   : > { %312 = vst [vmem:[%s2932_s8 + $0x2f] sm:$0x1] %v311_v47  ;;  %v411_v33 = vld [vmem:[%s2928_s7 + $0xc2] sm:$0x1]  ;;  %v413_v34 = vld [vmem:[%s2928_s7 + $0xc4] sm:$0x1] }
  0x40   : > { %314 = vst [vmem:[%s2932_s8 + $0x30] sm:$0x1] %v313_v48  ;;  %v415_v35 = vld [vmem:[%s2928_s7 + $0xc6] sm:$0x1]  ;;  %v417_v36 = vld [vmem:[%s2928_s7 + $0xc8] sm:$0x1] }
  0x41   : > { %316 = vst [vmem:[%s2932_s8 + $0x31] sm:$0x1] %v315_v49  ;;  %v419_v37 = vld [vmem:[%s2928_s7 + $0xca] sm:$0x1]  ;;  %v421_v38 = vld [vmem:[%s2928_s7 + $0xcc] sm:$0x1] }
  0x42   : > { %318 = vst [vmem:[%s2932_s8 + $0x32] sm:$0x1] %v317_v50  ;;  %v423_v39 = vld [vmem:[%s2928_s7 + $0xce] sm:$0x1]  ;;  %v425_v40 = vld [vmem:[%s2928_s7 + $0xd0] sm:$0x1] }
  0x43   : > { %320 = vst [vmem:[%s2932_s8 + $0x33] sm:$0x1] %v319_v51  ;;  %v427_v41 = vld [vmem:[%s2928_s7 + $0xd2] sm:$0x1]  ;;  %v429_v42 = vld [vmem:[%s2928_s7 + $0xd4] sm:$0x1] }
  0x44   : > { %322 = vst [vmem:[%s2932_s8 + $0x34] sm:$0x1] %v321_v52  ;;  %v431_v43 = vld [vmem:[%s2928_s7 + $0xd6] sm:$0x1]  ;;  %v433_v44 = vld [vmem:[%s2928_s7 + $0xd8] sm:$0x1] }
  0x45   : > { %324 = vst [vmem:[%s2932_s8 + $0x35] sm:$0x1] %v323_v53  ;;  %v435_v45 = vld [vmem:[%s2928_s7 + $0xda] sm:$0x1]  ;;  %v437_v46 = vld [vmem:[%s2928_s7 + $0xdc] sm:$0x1] }
  0x46   : > { %326 = vst [vmem:[%s2932_s8 + $0x36] sm:$0x1] %v325_v54  ;;  %v439_v47 = vld [vmem:[%s2928_s7 + $0xde] sm:$0x1]  ;;  %v441_v48 = vld [vmem:[%s2928_s7 + $0xe0] sm:$0x1] }
  0x47   : > { %328 = vst [vmem:[%s2932_s8 + $0x37] sm:$0x1] %v327_v55  ;;  %v443_v49 = vld [vmem:[%s2928_s7 + $0xe2] sm:$0x1]  ;;  %v445_v50 = vld [vmem:[%s2928_s7 + $0xe4] sm:$0x1] }
  0x48   : > { %330 = vst [vmem:[%s2932_s8 + $0x38] sm:$0x1] %v329_v56  ;;  %v447_v51 = vld [vmem:[%s2928_s7 + $0xe6] sm:$0x1]  ;;  %v449_v52 = vld [vmem:[%s2928_s7 + $0xe8] sm:$0x1] }
  0x49   : > { %332 = vst [vmem:[%s2932_s8 + $0x39] sm:$0x1] %v331_v57  ;;  %v451_v53 = vld [vmem:[%s2928_s7 + $0xea] sm:$0x1]  ;;  %v453_v54 = vld [vmem:[%s2928_s7 + $0xec] sm:$0x1] }
  0x4a   : > { %334 = vst [vmem:[%s2932_s8 + $0x3a] sm:$0x1] %v333_v58  ;;  %v455_v55 = vld [vmem:[%s2928_s7 + $0xee] sm:$0x1]  ;;  %v457_v56 = vld [vmem:[%s2928_s7 + $0xf0] sm:$0x1] }
  0x4b   : > { %336 = vst [vmem:[%s2932_s8 + $0x3b] sm:$0x1] %v335_v59  ;;  %v459_v57 = vld [vmem:[%s2928_s7 + $0xf2] sm:$0x1]  ;;  %v461_v58 = vld [vmem:[%s2928_s7 + $0xf4] sm:$0x1] }
  0x4c   : > { %338 = vst [vmem:[%s2932_s8 + $0x3c] sm:$0x1] %v337_v60  ;;  %v463_v59 = vld [vmem:[%s2928_s7 + $0xf6] sm:$0x1]  ;;  %v465_v60 = vld [vmem:[%s2928_s7 + $0xf8] sm:$0x1] }
  0x4d   : > { %340 = vst [vmem:[%s2932_s8 + $0x3d] sm:$0x1] %v339_v61  ;;  %v467_v61 = vld [vmem:[%s2928_s7 + $0xfa] sm:$0x1] }
  0x4e   : > { %342 = vst [vmem:[%s2932_s8 + $0x3e] sm:$0x1] %v341_v62  ;;  %v469_v62 = vld [vmem:[%s2928_s7 + $0xfc] sm:$0x1] }
  0x4f   : > { %344 = vst [vmem:[%s2932_s8 + $0x3f] sm:$0x1] %v343_v63  ;;  %v471_v63 = vld [vmem:[%s2928_s7 + $0xfe] sm:$0x1] }
  0x50   : > { %346 = vst [vmem:[%s2932_s8 + $0x40] sm:$0x1] %v345_v0 }
  0x51   : > { %348 = vst [vmem:[%s2932_s8 + $0x41] sm:$0x1] %v347_v1 }
  0x52   : > { %350 = vst [vmem:[%s2932_s8 + $0x42] sm:$0x1] %v349_v2 }
  0x53   : > { %352 = vst [vmem:[%s2932_s8 + $0x43] sm:$0x1] %v351_v3 }
  0x54   : > { %354 = vst [vmem:[%s2932_s8 + $0x44] sm:$0x1] %v353_v4 }
  0x55   : > { %356 = vst [vmem:[%s2932_s8 + $0x45] sm:$0x1] %v355_v5 }
  0x56   : > { %358 = vst [vmem:[%s2932_s8 + $0x46] sm:$0x1] %v357_v6 }
  0x57   : > { %360 = vst [vmem:[%s2932_s8 + $0x47] sm:$0x1] %v359_v7 }
  0x58   : > { %362 = vst [vmem:[%s2932_s8 + $0x48] sm:$0x1] %v361_v8 }
  0x59   : > { %364 = vst [vmem:[%s2932_s8 + $0x49] sm:$0x1] %v363_v9 }
  0x5a   : > { %366 = vst [vmem:[%s2932_s8 + $0x4a] sm:$0x1] %v365_v10 }
  0x5b   : > { %368 = vst [vmem:[%s2932_s8 + $0x4b] sm:$0x1] %v367_v11 }
  0x5c   : > { %370 = vst [vmem:[%s2932_s8 + $0x4c] sm:$0x1] %v369_v12 }
  0x5d   : > { %372 = vst [vmem:[%s2932_s8 + $0x4d] sm:$0x1] %v371_v13 }
  0x5e   : > { %374 = vst [vmem:[%s2932_s8 + $0x4e] sm:$0x1] %v373_v14 }
  0x5f   : > { %376 = vst [vmem:[%s2932_s8 + $0x4f] sm:$0x1] %v375_v15 }
  0x60   : > { %378 = vst [vmem:[%s2932_s8 + $0x50] sm:$0x1] %v377_v16 }
  0x61   : > { %380 = vst [vmem:[%s2932_s8 + $0x51] sm:$0x1] %v379_v17 }
  0x62   : > { %382 = vst [vmem:[%s2932_s8 + $0x52] sm:$0x1] %v381_v18 }
  0x63   : > { %384 = vst [vmem:[%s2932_s8 + $0x53] sm:$0x1] %v383_v19 }
  0x64   : > { %386 = vst [vmem:[%s2932_s8 + $0x54] sm:$0x1] %v385_v20 }
  0x65   : > { %388 = vst [vmem:[%s2932_s8 + $0x55] sm:$0x1] %v387_v21 }
  0x66   : > { %390 = vst [vmem:[%s2932_s8 + $0x56] sm:$0x1] %v389_v22 }
  0x67   : > { %392 = vst [vmem:[%s2932_s8 + $0x57] sm:$0x1] %v391_v23 }
  0x68   : > { %394 = vst [vmem:[%s2932_s8 + $0x58] sm:$0x1] %v393_v24 }
  0x69   : > { %396 = vst [vmem:[%s2932_s8 + $0x59] sm:$0x1] %v395_v25 }
  0x6a   : > { %398 = vst [vmem:[%s2932_s8 + $0x5a] sm:$0x1] %v397_v26 }
  0x6b   : > { %400 = vst [vmem:[%s2932_s8 + $0x5b] sm:$0x1] %v399_v27 }
  0x6c   : > { %402 = vst [vmem:[%s2932_s8 + $0x5c] sm:$0x1] %v401_v28 }
  0x6d   : > { %404 = vst [vmem:[%s2932_s8 + $0x5d] sm:$0x1] %v403_v29 }
  0x6e   : > { %406 = vst [vmem:[%s2932_s8 + $0x5e] sm:$0x1] %v405_v30 }
  0x6f   : > { %408 = vst [vmem:[%s2932_s8 + $0x5f] sm:$0x1] %v407_v31 }
  0x70   : > { %410 = vst [vmem:[%s2932_s8 + $0x60] sm:$0x1] %v409_v32 }
  0x71   : > { %412 = vst [vmem:[%s2932_s8 + $0x61] sm:$0x1] %v411_v33 }
  0x72   : > { %414 = vst [vmem:[%s2932_s8 + $0x62] sm:$0x1] %v413_v34 }
  0x73   : > { %416 = vst [vmem:[%s2932_s8 + $0x63] sm:$0x1] %v415_v35 }
  0x74   : > { %418 = vst [vmem:[%s2932_s8 + $0x64] sm:$0x1] %v417_v36 }
  0x75   : > { %420 = vst [vmem:[%s2932_s8 + $0x65] sm:$0x1] %v419_v37 }
  0x76   : > { %422 = vst [vmem:[%s2932_s8 + $0x66] sm:$0x1] %v421_v38 }
  0x77   : > { %424 = vst [vmem:[%s2932_s8 + $0x67] sm:$0x1] %v423_v39 }
  0x78   : > { %426 = vst [vmem:[%s2932_s8 + $0x68] sm:$0x1] %v425_v40 }
  0x79   : > { %428 = vst [vmem:[%s2932_s8 + $0x69] sm:$0x1] %v427_v41 }
  0x7a   : > { %430 = vst [vmem:[%s2932_s8 + $0x6a] sm:$0x1] %v429_v42 }
  0x7b   : > { %432 = vst [vmem:[%s2932_s8 + $0x6b] sm:$0x1] %v431_v43 }
  0x7c   : > { %434 = vst [vmem:[%s2932_s8 + $0x6c] sm:$0x1] %v433_v44 }
  0x7d   : > { %436 = vst [vmem:[%s2932_s8 + $0x6d] sm:$0x1] %v435_v45 }
  0x7e   : > { %438 = vst [vmem:[%s2932_s8 + $0x6e] sm:$0x1] %v437_v46 }
  0x7f   : > { %440 = vst [vmem:[%s2932_s8 + $0x6f] sm:$0x1] %v439_v47 }
  0x80   : > { %442 = vst [vmem:[%s2932_s8 + $0x70] sm:$0x1] %v441_v48 }
  0x81   : > { %444 = vst [vmem:[%s2932_s8 + $0x71] sm:$0x1] %v443_v49 }
  0x82   : > { %446 = vst [vmem:[%s2932_s8 + $0x72] sm:$0x1] %v445_v50 }
  0x83   : > { %448 = vst [vmem:[%s2932_s8 + $0x73] sm:$0x1] %v447_v51 }
  0x84   : > { %450 = vst [vmem:[%s2932_s8 + $0x74] sm:$0x1] %v449_v52 }
  0x85   : > { %452 = vst [vmem:[%s2932_s8 + $0x75] sm:$0x1] %v451_v53 }
  0x86   : > { %454 = vst [vmem:[%s2932_s8 + $0x76] sm:$0x1] %v453_v54 }
  0x87   : > { %456 = vst [vmem:[%s2932_s8 + $0x77] sm:$0x1] %v455_v55 }
  0x88   : > { %458 = vst [vmem:[%s2932_s8 + $0x78] sm:$0x1] %v457_v56 }
  0x89   : > { %460 = vst [vmem:[%s2932_s8 + $0x79] sm:$0x1] %v459_v57 }
  0x8a   : > { %462 = vst [vmem:[%s2932_s8 + $0x7a] sm:$0x1] %v461_v58 }
  0x8b   : > { %464 = vst [vmem:[%s2932_s8 + $0x7b] sm:$0x1] %v463_v59 }
  0x8c   : > { %466 = vst [vmem:[%s2932_s8 + $0x7c] sm:$0x1] %v465_v60 }
  0x8d   : > { %468 = vst [vmem:[%s2932_s8 + $0x7d] sm:$0x1] %v467_v61 }
  0x8e   : > { %470 = vst [vmem:[%s2932_s8 + $0x7e] sm:$0x1] %v469_v62 }
  0x8f   : > { %472 = vst [vmem:[%s2932_s8 + $0x7f] sm:$0x1] %v471_v63 }
  0x90 PF: > { %752 = sbr.rel (!%p2916_p3) target bundleno = 276 (0x114), region = 73  ;;  %s754_s9 = sand.u32 (%p2916_p3), 1, %s2851_s19  }
  0x91   : > { %s2632_s10 = sshll.u32 (%p2916_p3), %s2855_s20, 8  ;;  %s2631_s11 = sshll.u32 (%p2916_p3), %s754_s9, 7 }
  0x92   : > { %s3195_s14 = scalar_lea.vmem (%p2916_p3), %s3979_s2, %s2632_s10  ;;  %s3199_s15 = scalar_lea.vmem (%p2916_p3), [#allocation3], %s2631_s11 }
  0x93   : > { %v2633_v0 = vld [vmem:[%s3195_s14 + $0x1] sm:$0x1] (%p2916_p3)  ;;  %v2634_v1 = vld [vmem:[%s3195_s14 + $0x3] sm:$0x1] (%p2916_p3)  ;;  %v2635_v2 = vld [vmem:[%s3195_s14 + $0x5] sm:$0x1] (%p2916_p3) }
  0x94   : > { %778 = vst [vmem:[%s3199_s15] sm:$0x1] (%p2916_p3), %v2633_v0  ;;  %v2636_v3 = vld [vmem:[%s3195_s14 + $0x7] sm:$0x1] (%p2916_p3)  ;;  %v2637_v4 = vld [vmem:[%s3195_s14 + $0x9] sm:$0x1] (%p2916_p3) }
  0x95   : > { %780 = vst [vmem:[%s3199_s15 + $0x1] sm:$0x1] %v2634_v1  ;;  %v2638_v5 = vld [vmem:[%s3195_s14 + $0xb] sm:$0x1]  ;;  %v2639_v6 = vld [vmem:[%s3195_s14 + $0xd] sm:$0x1] }
  0x96   : > { %782 = vst [vmem:[%s3199_s15 + $0x2] sm:$0x1] %v2635_v2  ;;  %v2640_v7 = vld [vmem:[%s3195_s14 + $0xf] sm:$0x1]  ;;  %v2641_v8 = vld [vmem:[%s3195_s14 + $0x11] sm:$0x1] }
  0x97   : > { %784 = vst [vmem:[%s3199_s15 + $0x3] sm:$0x1] %v2636_v3  ;;  %v2642_v9 = vld [vmem:[%s3195_s14 + $0x13] sm:$0x1]  ;;  %v2643_v10 = vld [vmem:[%s3195_s14 + $0x15] sm:$0x1] }
  0x98   : > { %786 = vst [vmem:[%s3199_s15 + $0x4] sm:$0x1] %v2637_v4  ;;  %v2644_v11 = vld [vmem:[%s3195_s14 + $0x17] sm:$0x1]  ;;  %v2645_v12 = vld [vmem:[%s3195_s14 + $0x19] sm:$0x1] }
  0x99   : > { %788 = vst [vmem:[%s3199_s15 + $0x5] sm:$0x1] %v2638_v5  ;;  %v2646_v13 = vld [vmem:[%s3195_s14 + $0x1b] sm:$0x1]  ;;  %v2647_v14 = vld [vmem:[%s3195_s14 + $0x1d] sm:$0x1] }
  0x9a   : > { %790 = vst [vmem:[%s3199_s15 + $0x6] sm:$0x1] %v2639_v6  ;;  %v2648_v15 = vld [vmem:[%s3195_s14 + $0x1f] sm:$0x1]  ;;  %v2649_v16 = vld [vmem:[%s3195_s14 + $0x21] sm:$0x1] }
  0x9b   : > { %792 = vst [vmem:[%s3199_s15 + $0x7] sm:$0x1] %v2640_v7  ;;  %v2650_v17 = vld [vmem:[%s3195_s14 + $0x23] sm:$0x1]  ;;  %v2651_v18 = vld [vmem:[%s3195_s14 + $0x25] sm:$0x1] }
  0x9c   : > { %794 = vst [vmem:[%s3199_s15 + $0x8] sm:$0x1] %v2641_v8  ;;  %v2652_v19 = vld [vmem:[%s3195_s14 + $0x27] sm:$0x1]  ;;  %v2653_v20 = vld [vmem:[%s3195_s14 + $0x29] sm:$0x1] }
  0x9d   : > { %796 = vst [vmem:[%s3199_s15 + $0x9] sm:$0x1] %v2642_v9  ;;  %v2654_v21 = vld [vmem:[%s3195_s14 + $0x2b] sm:$0x1]  ;;  %v2655_v22 = vld [vmem:[%s3195_s14 + $0x2d] sm:$0x1] }
  0x9e   : > { %798 = vst [vmem:[%s3199_s15 + $0xa] sm:$0x1] %v2643_v10  ;;  %v2656_v23 = vld [vmem:[%s3195_s14 + $0x2f] sm:$0x1]  ;;  %v2657_v24 = vld [vmem:[%s3195_s14 + $0x31] sm:$0x1] }
  0x9f   : > { %800 = vst [vmem:[%s3199_s15 + $0xb] sm:$0x1] %v2644_v11  ;;  %v2658_v25 = vld [vmem:[%s3195_s14 + $0x33] sm:$0x1]  ;;  %v2659_v26 = vld [vmem:[%s3195_s14 + $0x35] sm:$0x1] }
  0xa0   : > { %802 = vst [vmem:[%s3199_s15 + $0xc] sm:$0x1] %v2645_v12  ;;  %v2660_v27 = vld [vmem:[%s3195_s14 + $0x37] sm:$0x1]  ;;  %v2661_v28 = vld [vmem:[%s3195_s14 + $0x39] sm:$0x1] }
  0xa1   : > { %804 = vst [vmem:[%s3199_s15 + $0xd] sm:$0x1] %v2646_v13  ;;  %v2662_v29 = vld [vmem:[%s3195_s14 + $0x3b] sm:$0x1]  ;;  %v2663_v30 = vld [vmem:[%s3195_s14 + $0x3d] sm:$0x1] }
  0xa2   : > { %806 = vst [vmem:[%s3199_s15 + $0xe] sm:$0x1] %v2647_v14  ;;  %v2664_v31 = vld [vmem:[%s3195_s14 + $0x3f] sm:$0x1]  ;;  %v2665_v32 = vld [vmem:[%s3195_s14 + $0x41] sm:$0x1] }
  0xa3   : > { %808 = vst [vmem:[%s3199_s15 + $0xf] sm:$0x1] %v2648_v15  ;;  %v2666_v33 = vld [vmem:[%s3195_s14 + $0x43] sm:$0x1]  ;;  %v2667_v34 = vld [vmem:[%s3195_s14 + $0x45] sm:$0x1] }
  0xa4   : > { %810 = vst [vmem:[%s3199_s15 + $0x10] sm:$0x1] %v2649_v16  ;;  %v2668_v35 = vld [vmem:[%s3195_s14 + $0x47] sm:$0x1]  ;;  %v2669_v36 = vld [vmem:[%s3195_s14 + $0x49] sm:$0x1] }
  0xa5   : > { %812 = vst [vmem:[%s3199_s15 + $0x11] sm:$0x1] %v2650_v17  ;;  %v2670_v37 = vld [vmem:[%s3195_s14 + $0x4b] sm:$0x1]  ;;  %v2671_v38 = vld [vmem:[%s3195_s14 + $0x4d] sm:$0x1] }
  0xa6   : > { %814 = vst [vmem:[%s3199_s15 + $0x12] sm:$0x1] %v2651_v18  ;;  %v2672_v39 = vld [vmem:[%s3195_s14 + $0x4f] sm:$0x1]  ;;  %v2673_v40 = vld [vmem:[%s3195_s14 + $0x51] sm:$0x1] }
  0xa7   : > { %816 = vst [vmem:[%s3199_s15 + $0x13] sm:$0x1] %v2652_v19  ;;  %v2674_v41 = vld [vmem:[%s3195_s14 + $0x53] sm:$0x1]  ;;  %v2675_v42 = vld [vmem:[%s3195_s14 + $0x55] sm:$0x1] }
  0xa8   : > { %818 = vst [vmem:[%s3199_s15 + $0x14] sm:$0x1] %v2653_v20  ;;  %v2676_v43 = vld [vmem:[%s3195_s14 + $0x57] sm:$0x1]  ;;  %v2677_v44 = vld [vmem:[%s3195_s14 + $0x59] sm:$0x1] }
  0xa9   : > { %820 = vst [vmem:[%s3199_s15 + $0x15] sm:$0x1] %v2654_v21  ;;  %v2678_v45 = vld [vmem:[%s3195_s14 + $0x5b] sm:$0x1]  ;;  %v2679_v46 = vld [vmem:[%s3195_s14 + $0x5d] sm:$0x1] }
  0xaa   : > { %822 = vst [vmem:[%s3199_s15 + $0x16] sm:$0x1] %v2655_v22  ;;  %v2680_v47 = vld [vmem:[%s3195_s14 + $0x5f] sm:$0x1]  ;;  %v2681_v48 = vld [vmem:[%s3195_s14 + $0x61] sm:$0x1] }
  0xab   : > { %824 = vst [vmem:[%s3199_s15 + $0x17] sm:$0x1] %v2656_v23  ;;  %v2682_v49 = vld [vmem:[%s3195_s14 + $0x63] sm:$0x1]  ;;  %v2683_v50 = vld [vmem:[%s3195_s14 + $0x65] sm:$0x1] }
  0xac   : > { %826 = vst [vmem:[%s3199_s15 + $0x18] sm:$0x1] %v2657_v24  ;;  %v2684_v51 = vld [vmem:[%s3195_s14 + $0x67] sm:$0x1]  ;;  %v2685_v52 = vld [vmem:[%s3195_s14 + $0x69] sm:$0x1] }
  0xad   : > { %828 = vst [vmem:[%s3199_s15 + $0x19] sm:$0x1] %v2658_v25  ;;  %v2686_v53 = vld [vmem:[%s3195_s14 + $0x6b] sm:$0x1]  ;;  %v2687_v54 = vld [vmem:[%s3195_s14 + $0x6d] sm:$0x1] }
  0xae   : > { %830 = vst [vmem:[%s3199_s15 + $0x1a] sm:$0x1] %v2659_v26  ;;  %v2688_v55 = vld [vmem:[%s3195_s14 + $0x6f] sm:$0x1]  ;;  %v2689_v56 = vld [vmem:[%s3195_s14 + $0x71] sm:$0x1] }
  0xaf   : > { %832 = vst [vmem:[%s3199_s15 + $0x1b] sm:$0x1] %v2660_v27  ;;  %v2690_v57 = vld [vmem:[%s3195_s14 + $0x73] sm:$0x1]  ;;  %v2691_v58 = vld [vmem:[%s3195_s14 + $0x75] sm:$0x1] }
  0xb0   : > { %834 = vst [vmem:[%s3199_s15 + $0x1c] sm:$0x1] %v2661_v28  ;;  %v2692_v59 = vld [vmem:[%s3195_s14 + $0x77] sm:$0x1]  ;;  %v2693_v60 = vld [vmem:[%s3195_s14 + $0x79] sm:$0x1] }
  0xb1   : > { %836 = vst [vmem:[%s3199_s15 + $0x1d] sm:$0x1] %v2662_v29  ;;  %v2694_v61 = vld [vmem:[%s3195_s14 + $0x7b] sm:$0x1]  ;;  %v2695_v62 = vld [vmem:[%s3195_s14 + $0x7d] sm:$0x1] }
  0xb2   : > { %838 = vst [vmem:[%s3199_s15 + $0x1e] sm:$0x1] %v2663_v30  ;;  %v2696_v63 = vld [vmem:[%s3195_s14 + $0x7f] sm:$0x1]  ;;  %v2697_v0 = vld [vmem:[%s3195_s14 + $0x81] sm:$0x1] }
  0xb3   : > { %840 = vst [vmem:[%s3199_s15 + $0x1f] sm:$0x1] %v2664_v31  ;;  %v2698_v1 = vld [vmem:[%s3195_s14 + $0x83] sm:$0x1]  ;;  %v2699_v2 = vld [vmem:[%s3195_s14 + $0x85] sm:$0x1] }
  0xb4   : > { %842 = vst [vmem:[%s3199_s15 + $0x20] sm:$0x1] %v2665_v32  ;;  %v2700_v3 = vld [vmem:[%s3195_s14 + $0x87] sm:$0x1]  ;;  %v2701_v4 = vld [vmem:[%s3195_s14 + $0x89] sm:$0x1] }
  0xb5   : > { %844 = vst [vmem:[%s3199_s15 + $0x21] sm:$0x1] %v2666_v33  ;;  %v2702_v5 = vld [vmem:[%s3195_s14 + $0x8b] sm:$0x1]  ;;  %v2703_v6 = vld [vmem:[%s3195_s14 + $0x8d] sm:$0x1] }
  0xb6   : > { %846 = vst [vmem:[%s3199_s15 + $0x22] sm:$0x1] %v2667_v34  ;;  %v2704_v7 = vld [vmem:[%s3195_s14 + $0x8f] sm:$0x1]  ;;  %v2705_v8 = vld [vmem:[%s3195_s14 + $0x91] sm:$0x1] }
  0xb7   : > { %848 = vst [vmem:[%s3199_s15 + $0x23] sm:$0x1] %v2668_v35  ;;  %v2706_v9 = vld [vmem:[%s3195_s14 + $0x93] sm:$0x1]  ;;  %v2707_v10 = vld [vmem:[%s3195_s14 + $0x95] sm:$0x1] }
  0xb8   : > { %850 = vst [vmem:[%s3199_s15 + $0x24] sm:$0x1] %v2669_v36  ;;  %v2708_v11 = vld [vmem:[%s3195_s14 + $0x97] sm:$0x1]  ;;  %v2709_v12 = vld [vmem:[%s3195_s14 + $0x99] sm:$0x1] }
  0xb9   : > { %852 = vst [vmem:[%s3199_s15 + $0x25] sm:$0x1] %v2670_v37  ;;  %v2710_v13 = vld [vmem:[%s3195_s14 + $0x9b] sm:$0x1]  ;;  %v2711_v14 = vld [vmem:[%s3195_s14 + $0x9d] sm:$0x1] }
  0xba   : > { %854 = vst [vmem:[%s3199_s15 + $0x26] sm:$0x1] %v2671_v38  ;;  %v2712_v15 = vld [vmem:[%s3195_s14 + $0x9f] sm:$0x1]  ;;  %v2713_v16 = vld [vmem:[%s3195_s14 + $0xa1] sm:$0x1] }
  0xbb   : > { %856 = vst [vmem:[%s3199_s15 + $0x27] sm:$0x1] %v2672_v39  ;;  %v2714_v17 = vld [vmem:[%s3195_s14 + $0xa3] sm:$0x1]  ;;  %v2715_v18 = vld [vmem:[%s3195_s14 + $0xa5] sm:$0x1] }
  0xbc   : > { %858 = vst [vmem:[%s3199_s15 + $0x28] sm:$0x1] %v2673_v40  ;;  %v2716_v19 = vld [vmem:[%s3195_s14 + $0xa7] sm:$0x1]  ;;  %v2717_v20 = vld [vmem:[%s3195_s14 + $0xa9] sm:$0x1] }
  0xbd   : > { %860 = vst [vmem:[%s3199_s15 + $0x29] sm:$0x1] %v2674_v41  ;;  %v2718_v21 = vld [vmem:[%s3195_s14 + $0xab] sm:$0x1]  ;;  %v2719_v22 = vld [vmem:[%s3195_s14 + $0xad] sm:$0x1] }
  0xbe   : > { %862 = vst [vmem:[%s3199_s15 + $0x2a] sm:$0x1] %v2675_v42  ;;  %v2720_v23 = vld [vmem:[%s3195_s14 + $0xaf] sm:$0x1]  ;;  %v2721_v24 = vld [vmem:[%s3195_s14 + $0xb1] sm:$0x1] }
  0xbf   : > { %864 = vst [vmem:[%s3199_s15 + $0x2b] sm:$0x1] %v2676_v43  ;;  %v2722_v25 = vld [vmem:[%s3195_s14 + $0xb3] sm:$0x1]  ;;  %v2723_v26 = vld [vmem:[%s3195_s14 + $0xb5] sm:$0x1] }
  0xc0   : > { %866 = vst [vmem:[%s3199_s15 + $0x2c] sm:$0x1] %v2677_v44  ;;  %v2724_v27 = vld [vmem:[%s3195_s14 + $0xb7] sm:$0x1]  ;;  %v2725_v28 = vld [vmem:[%s3195_s14 + $0xb9] sm:$0x1] }
  0xc1   : > { %868 = vst [vmem:[%s3199_s15 + $0x2d] sm:$0x1] %v2678_v45  ;;  %v2726_v29 = vld [vmem:[%s3195_s14 + $0xbb] sm:$0x1]  ;;  %v2727_v30 = vld [vmem:[%s3195_s14 + $0xbd] sm:$0x1] }
  0xc2   : > { %870 = vst [vmem:[%s3199_s15 + $0x2e] sm:$0x1] %v2679_v46  ;;  %v2728_v31 = vld [vmem:[%s3195_s14 + $0xbf] sm:$0x1]  ;;  %v2729_v32 = vld [vmem:[%s3195_s14 + $0xc1] sm:$0x1] }
  0xc3   : > { %872 = vst [vmem:[%s3199_s15 + $0x2f] sm:$0x1] %v2680_v47  ;;  %v2730_v33 = vld [vmem:[%s3195_s14 + $0xc3] sm:$0x1]  ;;  %v2731_v34 = vld [vmem:[%s3195_s14 + $0xc5] sm:$0x1] }
  0xc4   : > { %874 = vst [vmem:[%s3199_s15 + $0x30] sm:$0x1] %v2681_v48  ;;  %v2732_v35 = vld [vmem:[%s3195_s14 + $0xc7] sm:$0x1]  ;;  %v2733_v36 = vld [vmem:[%s3195_s14 + $0xc9] sm:$0x1] }
  0xc5   : > { %876 = vst [vmem:[%s3199_s15 + $0x31] sm:$0x1] %v2682_v49  ;;  %v2734_v37 = vld [vmem:[%s3195_s14 + $0xcb] sm:$0x1]  ;;  %v2735_v38 = vld [vmem:[%s3195_s14 + $0xcd] sm:$0x1] }
  0xc6   : > { %878 = vst [vmem:[%s3199_s15 + $0x32] sm:$0x1] %v2683_v50  ;;  %v2736_v39 = vld [vmem:[%s3195_s14 + $0xcf] sm:$0x1]  ;;  %v2737_v40 = vld [vmem:[%s3195_s14 + $0xd1] sm:$0x1] }
  0xc7   : > { %880 = vst [vmem:[%s3199_s15 + $0x33] sm:$0x1] %v2684_v51  ;;  %v2738_v41 = vld [vmem:[%s3195_s14 + $0xd3] sm:$0x1]  ;;  %v2739_v42 = vld [vmem:[%s3195_s14 + $0xd5] sm:$0x1] }
  0xc8   : > { %882 = vst [vmem:[%s3199_s15 + $0x34] sm:$0x1] %v2685_v52  ;;  %v2740_v43 = vld [vmem:[%s3195_s14 + $0xd7] sm:$0x1]  ;;  %v2741_v44 = vld [vmem:[%s3195_s14 + $0xd9] sm:$0x1] }
  0xc9   : > { %884 = vst [vmem:[%s3199_s15 + $0x35] sm:$0x1] %v2686_v53  ;;  %v2742_v45 = vld [vmem:[%s3195_s14 + $0xdb] sm:$0x1]  ;;  %v2743_v46 = vld [vmem:[%s3195_s14 + $0xdd] sm:$0x1] }
  0xca   : > { %886 = vst [vmem:[%s3199_s15 + $0x36] sm:$0x1] %v2687_v54  ;;  %v2744_v47 = vld [vmem:[%s3195_s14 + $0xdf] sm:$0x1]  ;;  %v2745_v48 = vld [vmem:[%s3195_s14 + $0xe1] sm:$0x1] }
  0xcb   : > { %888 = vst [vmem:[%s3199_s15 + $0x37] sm:$0x1] %v2688_v55  ;;  %v2746_v49 = vld [vmem:[%s3195_s14 + $0xe3] sm:$0x1]  ;;  %v2747_v50 = vld [vmem:[%s3195_s14 + $0xe5] sm:$0x1] }
  0xcc   : > { %890 = vst [vmem:[%s3199_s15 + $0x38] sm:$0x1] %v2689_v56  ;;  %v2748_v51 = vld [vmem:[%s3195_s14 + $0xe7] sm:$0x1]  ;;  %v2749_v52 = vld [vmem:[%s3195_s14 + $0xe9] sm:$0x1] }
  0xcd   : > { %892 = vst [vmem:[%s3199_s15 + $0x39] sm:$0x1] %v2690_v57  ;;  %v2750_v53 = vld [vmem:[%s3195_s14 + $0xeb] sm:$0x1]  ;;  %v2751_v54 = vld [vmem:[%s3195_s14 + $0xed] sm:$0x1] }
  0xce   : > { %894 = vst [vmem:[%s3199_s15 + $0x3a] sm:$0x1] %v2691_v58  ;;  %v2752_v55 = vld [vmem:[%s3195_s14 + $0xef] sm:$0x1]  ;;  %v2753_v56 = vld [vmem:[%s3195_s14 + $0xf1] sm:$0x1] }
  0xcf   : > { %896 = vst [vmem:[%s3199_s15 + $0x3b] sm:$0x1] %v2692_v59  ;;  %v2754_v57 = vld [vmem:[%s3195_s14 + $0xf3] sm:$0x1]  ;;  %v2755_v58 = vld [vmem:[%s3195_s14 + $0xf5] sm:$0x1] }
  0xd0   : > { %898 = vst [vmem:[%s3199_s15 + $0x3c] sm:$0x1] %v2693_v60  ;;  %v2756_v59 = vld [vmem:[%s3195_s14 + $0xf7] sm:$0x1]  ;;  %v2757_v60 = vld [vmem:[%s3195_s14 + $0xf9] sm:$0x1] }
  0xd1   : > { %900 = vst [vmem:[%s3199_s15 + $0x3d] sm:$0x1] %v2694_v61  ;;  %v2758_v61 = vld [vmem:[%s3195_s14 + $0xfb] sm:$0x1] }
  0xd2   : > { %902 = vst [vmem:[%s3199_s15 + $0x3e] sm:$0x1] %v2695_v62  ;;  %v2759_v62 = vld [vmem:[%s3195_s14 + $0xfd] sm:$0x1] }
  0xd3   : > { %904 = vst [vmem:[%s3199_s15 + $0x3f] sm:$0x1] %v2696_v63  ;;  %v2760_v63 = vld [vmem:[%s3195_s14 + $0xff] sm:$0x1] }
  0xd4   : > { %906 = vst [vmem:[%s3199_s15 + $0x40] sm:$0x1] %v2697_v0 }
  0xd5   : > { %908 = vst [vmem:[%s3199_s15 + $0x41] sm:$0x1] %v2698_v1 }
  0xd6   : > { %910 = vst [vmem:[%s3199_s15 + $0x42] sm:$0x1] %v2699_v2 }
  0xd7   : > { %912 = vst [vmem:[%s3199_s15 + $0x43] sm:$0x1] %v2700_v3 }
  0xd8   : > { %914 = vst [vmem:[%s3199_s15 + $0x44] sm:$0x1] %v2701_v4 }
  0xd9   : > { %916 = vst [vmem:[%s3199_s15 + $0x45] sm:$0x1] %v2702_v5 }
  0xda   : > { %918 = vst [vmem:[%s3199_s15 + $0x46] sm:$0x1] %v2703_v6 }
  0xdb   : > { %920 = vst [vmem:[%s3199_s15 + $0x47] sm:$0x1] %v2704_v7 }
  0xdc   : > { %922 = vst [vmem:[%s3199_s15 + $0x48] sm:$0x1] %v2705_v8 }
  0xdd   : > { %924 = vst [vmem:[%s3199_s15 + $0x49] sm:$0x1] %v2706_v9 }
  0xde   : > { %926 = vst [vmem:[%s3199_s15 + $0x4a] sm:$0x1] %v2707_v10 }
  0xdf   : > { %928 = vst [vmem:[%s3199_s15 + $0x4b] sm:$0x1] %v2708_v11 }
  0xe0   : > { %930 = vst [vmem:[%s3199_s15 + $0x4c] sm:$0x1] %v2709_v12 }
  0xe1   : > { %932 = vst [vmem:[%s3199_s15 + $0x4d] sm:$0x1] %v2710_v13 }
  0xe2   : > { %934 = vst [vmem:[%s3199_s15 + $0x4e] sm:$0x1] %v2711_v14 }
  0xe3   : > { %936 = vst [vmem:[%s3199_s15 + $0x4f] sm:$0x1] %v2712_v15 }
  0xe4   : > { %938 = vst [vmem:[%s3199_s15 + $0x50] sm:$0x1] %v2713_v16 }
  0xe5   : > { %940 = vst [vmem:[%s3199_s15 + $0x51] sm:$0x1] %v2714_v17 }
  0xe6   : > { %942 = vst [vmem:[%s3199_s15 + $0x52] sm:$0x1] %v2715_v18 }
  0xe7   : > { %944 = vst [vmem:[%s3199_s15 + $0x53] sm:$0x1] %v2716_v19 }
  0xe8   : > { %946 = vst [vmem:[%s3199_s15 + $0x54] sm:$0x1] %v2717_v20 }
  0xe9   : > { %948 = vst [vmem:[%s3199_s15 + $0x55] sm:$0x1] %v2718_v21 }
  0xea   : > { %950 = vst [vmem:[%s3199_s15 + $0x56] sm:$0x1] %v2719_v22 }
  0xeb   : > { %952 = vst [vmem:[%s3199_s15 + $0x57] sm:$0x1] %v2720_v23 }
  0xec   : > { %954 = vst [vmem:[%s3199_s15 + $0x58] sm:$0x1] %v2721_v24 }
  0xed   : > { %956 = vst [vmem:[%s3199_s15 + $0x59] sm:$0x1] %v2722_v25 }
  0xee   : > { %958 = vst [vmem:[%s3199_s15 + $0x5a] sm:$0x1] %v2723_v26 }
  0xef   : > { %960 = vst [vmem:[%s3199_s15 + $0x5b] sm:$0x1] %v2724_v27 }
  0xf0   : > { %962 = vst [vmem:[%s3199_s15 + $0x5c] sm:$0x1] %v2725_v28 }
  0xf1   : > { %964 = vst [vmem:[%s3199_s15 + $0x5d] sm:$0x1] %v2726_v29 }
  0xf2   : > { %966 = vst [vmem:[%s3199_s15 + $0x5e] sm:$0x1] %v2727_v30 }
  0xf3   : > { %968 = vst [vmem:[%s3199_s15 + $0x5f] sm:$0x1] %v2728_v31 }
  0xf4   : > { %970 = vst [vmem:[%s3199_s15 + $0x60] sm:$0x1] %v2729_v32 }
  0xf5   : > { %972 = vst [vmem:[%s3199_s15 + $0x61] sm:$0x1] %v2730_v33 }
  0xf6   : > { %974 = vst [vmem:[%s3199_s15 + $0x62] sm:$0x1] %v2731_v34 }
  0xf7   : > { %976 = vst [vmem:[%s3199_s15 + $0x63] sm:$0x1] %v2732_v35 }
  0xf8   : > { %978 = vst [vmem:[%s3199_s15 + $0x64] sm:$0x1] %v2733_v36 }
  0xf9   : > { %980 = vst [vmem:[%s3199_s15 + $0x65] sm:$0x1] %v2734_v37 }
  0xfa   : > { %982 = vst [vmem:[%s3199_s15 + $0x66] sm:$0x1] %v2735_v38 }
  0xfb   : > { %984 = vst [vmem:[%s3199_s15 + $0x67] sm:$0x1] %v2736_v39 }
  0xfc   : > { %986 = vst [vmem:[%s3199_s15 + $0x68] sm:$0x1] %v2737_v40 }
  0xfd   : > { %988 = vst [vmem:[%s3199_s15 + $0x69] sm:$0x1] %v2738_v41 }
  0xfe   : > { %990 = vst [vmem:[%s3199_s15 + $0x6a] sm:$0x1] %v2739_v42 }
  0xff   : > { %992 = vst [vmem:[%s3199_s15 + $0x6b] sm:$0x1] %v2740_v43 }
 0x100   : > { %994 = vst [vmem:[%s3199_s15 + $0x6c] sm:$0x1] %v2741_v44 }
 0x101   : > { %996 = vst [vmem:[%s3199_s15 + $0x6d] sm:$0x1] %v2742_v45 }
 0x102   : > { %998 = vst [vmem:[%s3199_s15 + $0x6e] sm:$0x1] %v2743_v46 }
 0x103   : > { %1000 = vst [vmem:[%s3199_s15 + $0x6f] sm:$0x1] %v2744_v47 }
 0x104   : > { %1002 = vst [vmem:[%s3199_s15 + $0x70] sm:$0x1] %v2745_v48 }
 0x105   : > { %1004 = vst [vmem:[%s3199_s15 + $0x71] sm:$0x1] %v2746_v49 }
 0x106   : > { %1006 = vst [vmem:[%s3199_s15 + $0x72] sm:$0x1] %v2747_v50 }
 0x107   : > { %1008 = vst [vmem:[%s3199_s15 + $0x73] sm:$0x1] %v2748_v51 }
 0x108   : > { %1010 = vst [vmem:[%s3199_s15 + $0x74] sm:$0x1] %v2749_v52 }
 0x109   : > { %1012 = vst [vmem:[%s3199_s15 + $0x75] sm:$0x1] %v2750_v53 }
 0x10a   : > { %1014 = vst [vmem:[%s3199_s15 + $0x76] sm:$0x1] %v2751_v54 }
 0x10b   : > { %1016 = vst [vmem:[%s3199_s15 + $0x77] sm:$0x1] %v2752_v55 }
 0x10c   : > { %1018 = vst [vmem:[%s3199_s15 + $0x78] sm:$0x1] %v2753_v56 }
 0x10d   : > { %1020 = vst [vmem:[%s3199_s15 + $0x79] sm:$0x1] %v2754_v57 }
 0x10e   : > { %1022 = vst [vmem:[%s3199_s15 + $0x7a] sm:$0x1] %v2755_v58 }
 0x10f   : > { %1024 = vst [vmem:[%s3199_s15 + $0x7b] sm:$0x1] %v2756_v59 }
 0x110   : > { %1026 = vst [vmem:[%s3199_s15 + $0x7c] sm:$0x1] %v2757_v60 }
 0x111   : > { %1028 = vst [vmem:[%s3199_s15 + $0x7d] sm:$0x1] %v2758_v61 }
 0x112   : > { %1030 = vst [vmem:[%s3199_s15 + $0x7e] sm:$0x1] %v2759_v62 }
 0x113   : > { %1032 = vst [vmem:[%s3199_s15 + $0x7f] sm:$0x1] %v2760_v63 }
 0x114 PF: > { %p2761_p5 = scmp.ge.s32.totalorder %s2855_s20, 1  ;;  %p1311_p6 = scmp.lt.s32.totalorder %s2855_s20, 3 }
 0x116   : > { %p1312_p7 = pnand %p2761_p5, %p1311_p6 }
 0x117   : > { %s1318_s23 = sand.u32 (!%p1312_p7), 1, %s2847_s18   ;;  %s2764_s27 = sshll.u32 (!%p1312_p7), %s2624_s21, 3 }
 0x118   : > { %1315 = sbr.rel (%p1312_p7) target bundleno = 1020 (0x3fc), region = 114  ;;  %s3461_s24 = sshll.u32 (!%p1312_p7), %s1318_s23, 7 }
 0x119   : > { %s3464_s26 = scalar_lea.vmem (!%p1312_p7), [#allocation2], %s3461_s24  ;;  %s3637_s18 = scalar_lea.vmem (!%p1312_p7), [#allocation3], %s3461_s24 }
 0x11a   : > { %p1362_p8 = scmp.lt.s32.totalorder (!%p1312_p7), %s2764_s27, 15  ;;  %s2857_s9 = smov (!%p1312_p7), 8  }
 0x11b   : > { %s2766_s10 = sshll.u32 (!%p1312_p7), %s2624_s21, 4 }
 0x11c   : > { %p1370_p9 = scmp.lt.s32.totalorder (!%p1312_p7), %s2766_s10, 31 }
 0x11d   : > { %v1375_v0 = vld [vmem:[%s3980_s3] sm:$0xf]  ;;  %vm1820_vm0 = vcmask 1043456   ;;  %v1377_v1 = vld [vmem:[%s3464_s26] sm:$0x1]  ;;  %vm1787_vm1 = vcmask 31744  }
 0x11e   : > { %2785 = vmatpush.msk.msra.mxu1 %vm1820_vm0, %v1375_v0  ;;  %2806 = vmatpush.msk.msra.mxu3 %vm1820_vm0, %v1375_v0  ;;  %v1378_v2 = vld [vmem:[%s3464_s26 + $0x1] sm:$0x1]  ;;  %v1379_v3 = vld [vmem:[%s3464_s26 + $0x2] sm:$0x1]  ;;  %v1380_v4 = vld [vmem:[%s3464_s26 + $0x3] sm:$0x1] }
 0x11f   : > { %2768 = vmatpush.msk.msra.mxu0 %vm1820_vm0, %v1375_v0  ;;  %2805 = vmatpush.msk.msra.mxu2 %vm1820_vm0, %v1375_v0  ;;  %1636 = vst [vmem:[#allocation1] ss:$9 sm:$0xff] %v1377_v1  ;;  %v1381_v5 = vld [vmem:[%s3464_s26 + $0x4] sm:$0x1]  ;;  %v1382_v6 = vld [vmem:[%s3464_s26 + $0x5] sm:$0x1] }
 0x120   : > { %1638 = vst [vmem:[#allocation1 + $0x1] ss:$9 sm:$0xff] %v1378_v2  ;;  %v1383_v7 = vld [vmem:[%s3464_s26 + $0x6] sm:$0x1]  ;;  %v1384_v8 = vld [vmem:[%s3464_s26 + $0x7] sm:$0x1] }
 0x121   : > { %1640 = vst [vmem:[#allocation1 + $0x2] ss:$9 sm:$0xff] %v1379_v3  ;;  %v1385_v9 = vld [vmem:[%s3464_s26 + $0x8] sm:$0x1]  ;;  %v1386_v10 = vld [vmem:[%s3464_s26 + $0x9] sm:$0x1] }
 0x122   : > { %1642 = vst [vmem:[#allocation1 + $0x3] ss:$9 sm:$0xff] %v1380_v4  ;;  %v1387_v11 = vld [vmem:[%s3464_s26 + $0xa] sm:$0x1]  ;;  %v1388_v13 = vld [vmem:[%s3464_s26 + $0xb] sm:$0x1] }
 0x123   : > { %1644 = vst [vmem:[#allocation1 + $0x4] ss:$9 sm:$0xff] %v1381_v5  ;;  %v1389_v14 = vld [vmem:[%s3464_s26 + $0xc] sm:$0x1]  ;;  %v1390_v15 = vld [vmem:[%s3464_s26 + $0xd] sm:$0x1] }
 0x124   : > { %1646 = vst [vmem:[#allocation1 + $0x5] ss:$9 sm:$0xff] %v1382_v6  ;;  %v1391_v16 = vld [vmem:[%s3464_s26 + $0xe] sm:$0x1]  ;;  %v1392_v17 = vld [vmem:[%s3464_s26 + $0xf] sm:$0x1] }
 0x125   : > { %1648 = vst [vmem:[#allocation1 + $0x6] ss:$9 sm:$0xff] %v1383_v7  ;;  %v1393_v18 = vld [vmem:[%s3464_s26 + $0x10] sm:$0x1]  ;;  %v1394_v19 = vld [vmem:[%s3464_s26 + $0x11] sm:$0x1] }
 0x126   : > { %1650 = vst [vmem:[#allocation1 + $0x7] ss:$9 sm:$0xff] %v1384_v8  ;;  %v1395_v20 = vld [vmem:[%s3464_s26 + $0x12] sm:$0x1]  ;;  %v1396_v22 = vld [vmem:[%s3464_s26 + $0x13] sm:$0x1] }
 0x127   : > { %v1397_v23 = vld [vmem:[%s3464_s26 + $0x14] sm:$0x1]  ;;  %v1398_v24 = vld [vmem:[%s3464_s26 + $0x15] sm:$0x1]  ;;  %v1399_v25 = vld [vmem:[%s3464_s26 + $0x16] sm:$0x1] }
 0x128   : > { %v1400_v26 = vld [vmem:[%s3464_s26 + $0x17] sm:$0x1]  ;;  %v1401_v27 = vld [vmem:[%s3464_s26 + $0x18] sm:$0x1]  ;;  %v1402_v28 = vld [vmem:[%s3464_s26 + $0x19] sm:$0x1] }
 0x129   : > { %v1403_v29 = vld [vmem:[%s3464_s26 + $0x1a] sm:$0x1]  ;;  %v1404_v31 = vld [vmem:[%s3464_s26 + $0x1b] sm:$0x1]  ;;  %v1405_v32 = vld [vmem:[%s3464_s26 + $0x1c] sm:$0x1] }
 0x12a   : > { %v1406_v33 = vld [vmem:[%s3464_s26 + $0x1d] sm:$0x1]  ;;  %v1407_v34 = vld [vmem:[%s3464_s26 + $0x1e] sm:$0x1]  ;;  %v1408_v35 = vld [vmem:[%s3464_s26 + $0x1f] sm:$0x1] }
 0x12b   : > { %v1409_v36 = vld [vmem:[%s3464_s26 + $0x20] sm:$0x1]  ;;  %v1410_v37 = vld [vmem:[%s3464_s26 + $0x21] sm:$0x1]  ;;  %v1411_v38 = vld [vmem:[%s3464_s26 + $0x22] sm:$0x1] }
 0x12c   : > { %v1412_v40 = vld [vmem:[%s3464_s26 + $0x23] sm:$0x1]  ;;  %v1413_v41 = vld [vmem:[%s3464_s26 + $0x24] sm:$0x1]  ;;  %v1414_v42 = vld [vmem:[%s3464_s26 + $0x25] sm:$0x1] }
 0x12d   : > { %v3477_v12 = vld [vmem:[#allocation1] sm:$0xff]  ;;  %v1415_v43 = vld [vmem:[%s3464_s26 + $0x26] sm:$0x1]  ;;  %v1416_v44 = vld [vmem:[%s3464_s26 + $0x27] sm:$0x1]  ;;  %s3988_s27 = smov (!%p1362_p8, %s2764_s27), 15 }
 0x12e   : > { %1652 = vst [vmem:[#allocation1] ss:$9 sm:$0xff] %v1385_v9  ;;  %v1417_v45 = vld [vmem:[%s3464_s26 + $0x28] sm:$0x1]  ;;  %v1418_v46 = vld [vmem:[%s3464_s26 + $0x29] sm:$0x1]  ;;  %2769 = vmatmul.msk.f32.vlgmr.msra.gmra.mxu0 %vm1787_vm1, %v3477_v12 }
 0x12f   : > { %1653 = vst [vmem:[#allocation1 + $0x1] ss:$9 sm:$0xff] %v1386_v10  ;;  %v1419_v47 = vld [vmem:[%s3464_s26 + $0x2a] sm:$0x1]  ;;  %v1420_v49 = vld [vmem:[%s3464_s26 + $0x2b] sm:$0x1] }
 0x130   : > { %1654 = vst [vmem:[#allocation1 + $0x2] ss:$9 sm:$0xff] %v1387_v11  ;;  %v1421_v50 = vld [vmem:[%s3464_s26 + $0x2c] sm:$0x1]  ;;  %v1422_v51 = vld [vmem:[%s3464_s26 + $0x2d] sm:$0x1] }
 0x131   : > { %1655 = vst [vmem:[#allocation1 + $0x3] ss:$9 sm:$0xff] %v1388_v13  ;;  %v1423_v52 = vld [vmem:[%s3464_s26 + $0x2e] sm:$0x1]  ;;  %v1424_v53 = vld [vmem:[%s3464_s26 + $0x2f] sm:$0x1] }
 0x132   : > { %1656 = vst [vmem:[#allocation1 + $0x4] ss:$9 sm:$0xff] %v1389_v14  ;;  %v1425_v54 = vld [vmem:[%s3464_s26 + $0x30] sm:$0x1]  ;;  %v1426_v55 = vld [vmem:[%s3464_s26 + $0x31] sm:$0x1] }
 0x133   : > { %1657 = vst [vmem:[#allocation1 + $0x5] ss:$9 sm:$0xff] %v1390_v15  ;;  %v1427_v56 = vld [vmem:[%s3464_s26 + $0x32] sm:$0x1]  ;;  %v1428_v58 = vld [vmem:[%s3464_s26 + $0x33] sm:$0x1] }
 0x134   : > { %1658 = vst [vmem:[#allocation1 + $0x6] ss:$9 sm:$0xff] %v1391_v16  ;;  %v1429_v59 = vld [vmem:[%s3464_s26 + $0x34] sm:$0x1]  ;;  %v1430_v60 = vld [vmem:[%s3464_s26 + $0x35] sm:$0x1] }
 0x135   : > { %1659 = vst [vmem:[#allocation1 + $0x7] ss:$9 sm:$0xff] %v1392_v17  ;;  %v1431_v61 = vld [vmem:[%s3464_s26 + $0x36] sm:$0x1]  ;;  %v1432_v62 = vld [vmem:[%s3464_s26 + $0x37] sm:$0x1] }
 0x136   : > { %v1433_v63 = vld [vmem:[%s3464_s26 + $0x38] sm:$0x1]  ;;  %v1434_v0 = vld [vmem:[%s3464_s26 + $0x39] sm:$0x1]  ;;  %v1435_v1 = vld [vmem:[%s3464_s26 + $0x3a] sm:$0x1] }
 0x137   : > { %v1436_v3 = vld [vmem:[%s3464_s26 + $0x3b] sm:$0x1]  ;;  %v1437_v4 = vld [vmem:[%s3464_s26 + $0x3c] sm:$0x1]  ;;  %v1438_v5 = vld [vmem:[%s3464_s26 + $0x3d] sm:$0x1] }
 0x138   : > { %v1439_v6 = vld [vmem:[%s3464_s26 + $0x3e] sm:$0x1]  ;;  %v1440_v7 = vld [vmem:[%s3464_s26 + $0x3f] sm:$0x1]  ;;  %v1441_v8 = vld [vmem:[%s3464_s26 + $0x40] sm:$0x1] }
 0x139   : > { %v1442_v9 = vld [vmem:[%s3464_s26 + $0x41] sm:$0x1]  ;;  %v1443_v10 = vld [vmem:[%s3464_s26 + $0x42] sm:$0x1]  ;;  %v1444_v13 = vld [vmem:[%s3464_s26 + $0x43] sm:$0x1] }
 0x13a   : > { %v1445_v14 = vld [vmem:[%s3464_s26 + $0x44] sm:$0x1]  ;;  %v1446_v15 = vld [vmem:[%s3464_s26 + $0x45] sm:$0x1]  ;;  %v1447_v16 = vld [vmem:[%s3464_s26 + $0x46] sm:$0x1] }
 0x13b   : > { %v1448_v17 = vld [vmem:[%s3464_s26 + $0x47] sm:$0x1]  ;;  %v1497_v12 = vld [vmem:[%s3464_s26 + $0x78] sm:$0x1]  ;;  %s2765_s28 = sshll.u32 %s3988_s27, 3  ;;  %s3990_s10 = smov (!%p1370_p9, %s2766_s10), 31 }
 0x13c   : > { %v3487_v21 = vld [vmem:[#allocation1] sm:$0xff]  ;;  %s3782_s6 = scalar_lea.vmem %s3977_s0, %s2765_s28  ;;  %s2767_s11 = sshll.u32 %s3990_s10, 3  ;;  %vm2497_vm2 = vcmask 64512   ;;  %vm2514_vm3 = vcmask 130048  }
 0x13d   : > { %1661 = vst [vmem:[#allocation1] ss:$9 sm:$0xff] %v1393_v18  ;;  %v1449_v18 = vld [vmem:[%s3464_s26 + $0x48] sm:$0x1]  ;;  %2770 = vmatmul.msk.f32.gmra.mxu0 %vm1787_vm1, %v3487_v21  ;;  %v1502_v21 = vld [vmem:[%s3464_s26 + $0x7d] sm:$0x1]  ;;  %s3878_s12 = scalar_lea.vmem %s3982_s5, %s2767_s11 }
 0x13e   : > { %1662 = vst [vmem:[#allocation1 + $0x1] ss:$9 sm:$0xff] %v1394_v19  ;;  %v1450_v19 = vld [vmem:[%s3464_s26 + $0x49] sm:$0x1] }
 0x13f   : > { %1663 = vst [vmem:[#allocation1 + $0x2] ss:$9 sm:$0xff] %v1395_v20  ;;  %v1451_v20 = vld [vmem:[%s3464_s26 + $0x4a] sm:$0x1] }
 0x140   : > { %1664 = vst [vmem:[#allocation1 + $0x3] ss:$9 sm:$0xff] %v1396_v22 }
 0x141   : > { %1665 = vst [vmem:[#allocation1 + $0x4] ss:$9 sm:$0xff] %v1397_v23  ;;  %v1452_v23 = vld [vmem:[%s3464_s26 + $0x4b] sm:$0x1] }
 0x142   : > { %1666 = vst [vmem:[#allocation1 + $0x5] ss:$9 sm:$0xff] %v1398_v24  ;;  %v1453_v24 = vld [vmem:[%s3464_s26 + $0x4c] sm:$0x1] }
 0x143   : > { %1667 = vst [vmem:[#allocation1 + $0x6] ss:$9 sm:$0xff] %v1399_v25  ;;  %v1454_v25 = vld [vmem:[%s3464_s26 + $0x4d] sm:$0x1] }
 0x144   : > { %1668 = vst [vmem:[#allocation1 + $0x7] ss:$9 sm:$0xff] %v1400_v26  ;;  %v1455_v26 = vld [vmem:[%s3464_s26 + $0x4e] sm:$0x1] }
 0x14b   : > { %v3497_v30 = vld [vmem:[#allocation1] sm:$0xff] }
 0x14c   : > { %1670 = vst [vmem:[#allocation1] ss:$9 sm:$0xff] %v1401_v27  ;;  %v1456_v27 = vld [vmem:[%s3464_s26 + $0x4f] sm:$0x1]  ;;  %2771 = vmatmul.msk.f32.gmra.mxu0 %vm1787_vm1, %v3497_v30  ;;  %v1889_v30 = vld [vmem:[%s3637_s18] sm:$0x1] }
 0x14d   : > { %1671 = vst [vmem:[#allocation1 + $0x1] ss:$9 sm:$0xff] %v1402_v28  ;;  %v1457_v28 = vld [vmem:[%s3464_s26 + $0x50] sm:$0x1] }
 0x14e   : > { %1672 = vst [vmem:[#allocation1 + $0x2] ss:$9 sm:$0xff] %v1403_v29  ;;  %v1458_v29 = vld [vmem:[%s3464_s26 + $0x51] sm:$0x1] }
 0x14f   : > { %1673 = vst [vmem:[#allocation1 + $0x3] ss:$9 sm:$0xff] %v1404_v31  ;;  %v1459_v31 = vld [vmem:[%s3464_s26 + $0x52] sm:$0x1] }
 0x150   : > { %1674 = vst [vmem:[#allocation1 + $0x4] ss:$9 sm:$0xff] %v1405_v32 }
 0x151   : > { %1675 = vst [vmem:[#allocation1 + $0x5] ss:$9 sm:$0xff] %v1406_v33  ;;  %v1460_v33 = vld [vmem:[%s3464_s26 + $0x53] sm:$0x1] }
 0x152   : > { %1676 = vst [vmem:[#allocation1 + $0x6] ss:$9 sm:$0xff] %v1407_v34  ;;  %v1461_v34 = vld [vmem:[%s3464_s26 + $0x54] sm:$0x1] }
 0x153   : > { %1677 = vst [vmem:[#allocation1 + $0x7] ss:$9 sm:$0xff] %v1408_v35  ;;  %v1462_v35 = vld [vmem:[%s3464_s26 + $0x55] sm:$0x1] }
 0x15a   : > { %v3507_v39 = vld [vmem:[#allocation1] sm:$0xff] }
 0x15b   : > { %1679 = vst [vmem:[#allocation1] ss:$9 sm:$0xff] %v1409_v36  ;;  %v1463_v36 = vld [vmem:[%s3464_s26 + $0x56] sm:$0x1]  ;;  %2772 = vmatmul.msk.f32.gmra.mxu0 %vm1787_vm1, %v3507_v39  ;;  %v1893_v39 = vld [vmem:[%s3637_s18 + $0x4] sm:$0x1] }
 0x15c   : > { %1680 = vst [vmem:[#allocation1 + $0x1] ss:$9 sm:$0xff] %v1410_v37  ;;  %v1464_v37 = vld [vmem:[%s3464_s26 + $0x57] sm:$0x1] }
 0x15d   : > { %1681 = vst [vmem:[#allocation1 + $0x2] ss:$9 sm:$0xff] %v1411_v38  ;;  %v1465_v38 = vld [vmem:[%s3464_s26 + $0x58] sm:$0x1] }
 0x15e   : > { %1682 = vst [vmem:[#allocation1 + $0x3] ss:$9 sm:$0xff] %v1412_v40  ;;  %v1466_v40 = vld [vmem:[%s3464_s26 + $0x59] sm:$0x1] }
 0x15f   : > { %1683 = vst [vmem:[#allocation1 + $0x4] ss:$9 sm:$0xff] %v1413_v41  ;;  %v1467_v41 = vld [vmem:[%s3464_s26 + $0x5a] sm:$0x1] }
 0x160   : > { %1684 = vst [vmem:[#allocation1 + $0x5] ss:$9 sm:$0xff] %v1414_v42 }
 0x161   : > { %1685 = vst [vmem:[#allocation1 + $0x6] ss:$9 sm:$0xff] %v1415_v43  ;;  %v1468_v43 = vld [vmem:[%s3464_s26 + $0x5b] sm:$0x1] }
 0x162   : > { %1686 = vst [vmem:[#allocation1 + $0x7] ss:$9 sm:$0xff] %v1416_v44  ;;  %v1469_v44 = vld [vmem:[%s3464_s26 + $0x5c] sm:$0x1] }
 0x169   : > { %v3517_v48 = vld [vmem:[#allocation1] sm:$0xff] }
 0x16a   : > { %1688 = vst [vmem:[#allocation1] ss:$9 sm:$0xff] %v1417_v45  ;;  %v1470_v45 = vld [vmem:[%s3464_s26 + $0x5d] sm:$0x1]  ;;  %2773 = vmatmul.msk.f32.gmra.mxu0 %vm1787_vm1, %v3517_v48  ;;  %v1897_v48 = vld [vmem:[%s3637_s18 + $0x8] sm:$0x1] }
 0x16b   : > { %1689 = vst [vmem:[#allocation1 + $0x1] ss:$9 sm:$0xff] %v1418_v46  ;;  %v1471_v46 = vld [vmem:[%s3464_s26 + $0x5e] sm:$0x1] }
 0x16c   : > { %1690 = vst [vmem:[#allocation1 + $0x2] ss:$9 sm:$0xff] %v1419_v47  ;;  %v1472_v47 = vld [vmem:[%s3464_s26 + $0x5f] sm:$0x1] }
 0x16d   : > { %1691 = vst [vmem:[#allocation1 + $0x3] ss:$9 sm:$0xff] %v1420_v49  ;;  %v1473_v49 = vld [vmem:[%s3464_s26 + $0x60] sm:$0x1] }
 0x16e   : > { %1692 = vst [vmem:[#allocation1 + $0x4] ss:$9 sm:$0xff] %v1421_v50  ;;  %v1474_v50 = vld [vmem:[%s3464_s26 + $0x61] sm:$0x1] }
 0x16f   : > { %1693 = vst [vmem:[#allocation1 + $0x5] ss:$9 sm:$0xff] %v1422_v51  ;;  %v1475_v51 = vld [vmem:[%s3464_s26 + $0x62] sm:$0x1] }
 0x170   : > { %1694 = vst [vmem:[#allocation1 + $0x6] ss:$9 sm:$0xff] %v1423_v52 }
 0x171   : > { %1695 = vst [vmem:[#allocation1 + $0x7] ss:$9 sm:$0xff] %v1424_v53  ;;  %v1476_v53 = vld [vmem:[%s3464_s26 + $0x63] sm:$0x1] }
 0x178   : > { %v3527_v57 = vld [vmem:[#allocation1] sm:$0xff] }
 0x179   : > { %1697 = vst [vmem:[#allocation1] ss:$9 sm:$0xff] %v1425_v54  ;;  %v1477_v54 = vld [vmem:[%s3464_s26 + $0x64] sm:$0x1]  ;;  %2774 = vmatmul.msk.f32.gmra.mxu0 %vm1787_vm1, %v3527_v57  ;;  %v1902_v57 = vld [vmem:[%s3637_s18 + $0xd] sm:$0x1] }
 0x17a   : > { %1698 = vst [vmem:[#allocation1 + $0x1] ss:$9 sm:$0xff] %v1426_v55  ;;  %v1478_v55 = vld [vmem:[%s3464_s26 + $0x65] sm:$0x1] }
 0x17b   : > { %1699 = vst [vmem:[#allocation1 + $0x2] ss:$9 sm:$0xff] %v1427_v56  ;;  %v1479_v56 = vld [vmem:[%s3464_s26 + $0x66] sm:$0x1] }
 0x17c   : > { %1700 = vst [vmem:[#allocation1 + $0x3] ss:$9 sm:$0xff] %v1428_v58  ;;  %v1480_v58 = vld [vmem:[%s3464_s26 + $0x67] sm:$0x1] }
 0x17d   : > { %1701 = vst [vmem:[#allocation1 + $0x4] ss:$9 sm:$0xff] %v1429_v59  ;;  %v1481_v59 = vld [vmem:[%s3464_s26 + $0x68] sm:$0x1] }
 0x17e   : > { %1702 = vst [vmem:[#allocation1 + $0x5] ss:$9 sm:$0xff] %v1430_v60  ;;  %v1482_v60 = vld [vmem:[%s3464_s26 + $0x69] sm:$0x1] }
 0x17f   : > { %1703 = vst [vmem:[#allocation1 + $0x6] ss:$9 sm:$0xff] %v1431_v61  ;;  %v1483_v61 = vld [vmem:[%s3464_s26 + $0x6a] sm:$0x1] }
 0x180   : > { %1704 = vst [vmem:[#allocation1 + $0x7] ss:$9 sm:$0xff] %v1432_v62 }
 0x187   : > { %v3537_v2 = vld [vmem:[#allocation1] sm:$0xff] }
 0x188   : > { %1706 = vst [vmem:[#allocation1] ss:$9 sm:$0xff] %v1433_v63  ;;  %v1484_v63 = vld [vmem:[%s3464_s26 + $0x6b] sm:$0x1]  ;;  %2775 = vmatmul.msk.f32.gmra.mxu0 %vm1787_vm1, %v3537_v2  ;;  %v1905_v2 = vld [vmem:[%s3637_s18 + $0x10] sm:$0x1] }
 0x189   : > { %1707 = vst [vmem:[#allocation1 + $0x1] ss:$9 sm:$0xff] %v1434_v0  ;;  %v1485_v0 = vld [vmem:[%s3464_s26 + $0x6c] sm:$0x1] }
 0x18a   : > { %1708 = vst [vmem:[#allocation1 + $0x2] ss:$9 sm:$0xff] %v1435_v1  ;;  %v1486_v1 = vld [vmem:[%s3464_s26 + $0x6d] sm:$0x1] }
 0x18b   : > { %1709 = vst [vmem:[#allocation1 + $0x3] ss:$9 sm:$0xff] %v1436_v3  ;;  %v1487_v3 = vld [vmem:[%s3464_s26 + $0x6e] sm:$0x1] }
 0x18c   : > { %1710 = vst [vmem:[#allocation1 + $0x4] ss:$9 sm:$0xff] %v1437_v4  ;;  %v1488_v4 = vld [vmem:[%s3464_s26 + $0x6f] sm:$0x1] }
 0x18d   : > { %1711 = vst [vmem:[#allocation1 + $0x5] ss:$9 sm:$0xff] %v1438_v5  ;;  %v1489_v5 = vld [vmem:[%s3464_s26 + $0x70] sm:$0x1] }
 0x18e   : > { %1712 = vst [vmem:[#allocation1 + $0x6] ss:$9 sm:$0xff] %v1439_v6  ;;  %v1490_v6 = vld [vmem:[%s3464_s26 + $0x71] sm:$0x1] }
 0x18f   : > { %1713 = vst [vmem:[#allocation1 + $0x7] ss:$9 sm:$0xff] %v1440_v7  ;;  %v1491_v7 = vld [vmem:[%s3464_s26 + $0x72] sm:$0x1] }
 0x196   : > { %v3547_v11 = vld [vmem:[#allocation1] sm:$0xff] }
 0x197   : > { %1715 = vst [vmem:[#allocation1] ss:$9 sm:$0xff] %v1441_v8  ;;  %2776 = vmatmul.msk.f32.gmra.mxu0 %vm1787_vm1, %v3547_v11  ;;  %v1911_v11 = vld [vmem:[%s3637_s18 + $0x16] sm:$0x1] }
 0x198   : > { %1716 = vst [vmem:[#allocation1 + $0x1] ss:$9 sm:$0xff] %v1442_v9  ;;  %v1492_v9 = vld [vmem:[%s3464_s26 + $0x73] sm:$0x1] }
 0x199   : > { %1717 = vst [vmem:[#allocation1 + $0x2] ss:$9 sm:$0xff] %v1443_v10  ;;  %v1493_v10 = vld [vmem:[%s3464_s26 + $0x74] sm:$0x1] }
 0x19a   : > { %1718 = vst [vmem:[#allocation1 + $0x3] ss:$9 sm:$0xff] %v1444_v13  ;;  %v1494_v13 = vld [vmem:[%s3464_s26 + $0x75] sm:$0x1] }
 0x19b   : > { %1719 = vst [vmem:[#allocation1 + $0x4] ss:$9 sm:$0xff] %v1445_v14  ;;  %v1495_v14 = vld [vmem:[%s3464_s26 + $0x76] sm:$0x1] }
 0x19c   : > { %1720 = vst [vmem:[#allocation1 + $0x5] ss:$9 sm:$0xff] %v1446_v15  ;;  %v1496_v15 = vld [vmem:[%s3464_s26 + $0x77] sm:$0x1] }
 0x19d   : > { %1721 = vst [vmem:[#allocation1 + $0x6] ss:$9 sm:$0xff] %v1447_v16  ;;  %v1498_v16 = vld [vmem:[%s3464_s26 + $0x79] sm:$0x1] }
 0x19e   : > { %1722 = vst [vmem:[#allocation1 + $0x7] ss:$9 sm:$0xff] %v1448_v17  ;;  %v1499_v17 = vld [vmem:[%s3464_s26 + $0x7a] sm:$0x1] }
 0x1a5   : > { %v3557_v22 = vld [vmem:[#allocation1] sm:$0xff] }
 0x1a6   : > { %1724 = vst [vmem:[#allocation1] ss:$9 sm:$0xff] %v1449_v18  ;;  %2777 = vmatmul.msk.f32.vlgmr.msra.gmra.mxu2 %vm1787_vm1, %v3557_v22  ;;  %v1503_v22 = vld [vmem:[%s3464_s26 + $0x7e] sm:$0x1] }
 0x1a7   : > { %1725 = vst [vmem:[#allocation1 + $0x1] ss:$9 sm:$0xff] %v1450_v19  ;;  %v1500_v19 = vld [vmem:[%s3464_s26 + $0x7b] sm:$0x1] }
 0x1a8   : > { %1726 = vst [vmem:[#allocation1 + $0x2] ss:$9 sm:$0xff] %v1451_v20  ;;  %v1501_v20 = vld [vmem:[%s3464_s26 + $0x7c] sm:$0x1] }
 0x1a9   : > { %1727 = vst [vmem:[#allocation1 + $0x3] ss:$9 sm:$0xff] %v1452_v23  ;;  %v1504_v23 = vld [vmem:[%s3464_s26 + $0x7f] sm:$0x1] }
 0x1aa   : > { %1728 = vst [vmem:[#allocation1 + $0x4] ss:$9 sm:$0xff] %v1453_v24  ;;  %v1890_v24 = vld [vmem:[%s3637_s18 + $0x1] sm:$0x1] }
 0x1ab   : > { %1729 = vst [vmem:[#allocation1 + $0x5] ss:$9 sm:$0xff] %v1454_v25 }
 0x1ac   : > { %1730 = vst [vmem:[#allocation1 + $0x6] ss:$9 sm:$0xff] %v1455_v26  ;;  %v1891_v26 = vld [vmem:[%s3637_s18 + $0x2] sm:$0x1] }
 0x1ad   : > { %1731 = vst [vmem:[#allocation1 + $0x7] ss:$9 sm:$0xff] %v1456_v27  ;;  %v1892_v27 = vld [vmem:[%s3637_s18 + $0x3] sm:$0x1] }
 0x1b4   : > { %v3567_v32 = vld [vmem:[#allocation1] sm:$0xff] }
 0x1b5   : > { %1733 = vst [vmem:[#allocation1] ss:$9 sm:$0xff] %v1457_v28  ;;  %2778 = vmatmul.msk.f32.gmra.mxu2 %vm1787_vm1, %v3567_v32  ;;  %v1894_v28 = vld [vmem:[%s3637_s18 + $0x5] sm:$0x1]  ;;  %v1898_v32 = vld [vmem:[%s3637_s18 + $0x9] sm:$0x1] }
 0x1b6   : > { %1734 = vst [vmem:[#allocation1 + $0x1] ss:$9 sm:$0xff] %v1458_v29  ;;  %v1895_v29 = vld [vmem:[%s3637_s18 + $0x6] sm:$0x1] }
 0x1b7   : > { %1735 = vst [vmem:[#allocation1 + $0x2] ss:$9 sm:$0xff] %v1459_v31  ;;  %v1896_v31 = vld [vmem:[%s3637_s18 + $0x7] sm:$0x1] }
 0x1b8   : > { %1736 = vst [vmem:[#allocation1 + $0x3] ss:$9 sm:$0xff] %v1460_v33 }
 0x1b9   : > { %1737 = vst [vmem:[#allocation1 + $0x4] ss:$9 sm:$0xff] %v1461_v34  ;;  %v1899_v34 = vld [vmem:[%s3637_s18 + $0xa] sm:$0x1] }
 0x1ba   : > { %1738 = vst [vmem:[#allocation1 + $0x5] ss:$9 sm:$0xff] %v1462_v35  ;;  %v1900_v35 = vld [vmem:[%s3637_s18 + $0xb] sm:$0x1] }
 0x1bb   : > { %1739 = vst [vmem:[#allocation1 + $0x6] ss:$9 sm:$0xff] %v1463_v36  ;;  %v1901_v36 = vld [vmem:[%s3637_s18 + $0xc] sm:$0x1] }
 0x1bc   : > { %1740 = vst [vmem:[#allocation1 + $0x7] ss:$9 sm:$0xff] %v1464_v37  ;;  %v1903_v37 = vld [vmem:[%s3637_s18 + $0xe] sm:$0x1] }
 0x1c3   : > { %v3577_v42 = vld [vmem:[#allocation1] sm:$0xff] }
 0x1c4   : > { %1742 = vst [vmem:[#allocation1] ss:$9 sm:$0xff] %v1465_v38  ;;  %2779 = vmatmul.msk.f32.gmra.mxu2 %vm1787_vm1, %v3577_v42  ;;  %v1904_v38 = vld [vmem:[%s3637_s18 + $0xf] sm:$0x1]  ;;  %v1907_v42 = vld [vmem:[%s3637_s18 + $0x12] sm:$0x1] }
 0x1c5   : > { %1743 = vst [vmem:[#allocation1 + $0x1] ss:$9 sm:$0xff] %v1466_v40  ;;  %v1906_v40 = vld [vmem:[%s3637_s18 + $0x11] sm:$0x1] }
 0x1c6   : > { %1744 = vst [vmem:[#allocation1 + $0x2] ss:$9 sm:$0xff] %v1467_v41 }
 0x1c7   : > { %1745 = vst [vmem:[#allocation1 + $0x3] ss:$9 sm:$0xff] %v1468_v43  ;;  %v1908_v43 = vld [vmem:[%s3637_s18 + $0x13] sm:$0x1] }
 0x1c8   : > { %1746 = vst [vmem:[#allocation1 + $0x4] ss:$9 sm:$0xff] %v1469_v44  ;;  %v1909_v44 = vld [vmem:[%s3637_s18 + $0x14] sm:$0x1] }
 0x1c9   : > { %1747 = vst [vmem:[#allocation1 + $0x5] ss:$9 sm:$0xff] %v1470_v45  ;;  %v1910_v45 = vld [vmem:[%s3637_s18 + $0x15] sm:$0x1] }
 0x1ca   : > { %1748 = vst [vmem:[#allocation1 + $0x6] ss:$9 sm:$0xff] %v1471_v46  ;;  %v1912_v46 = vld [vmem:[%s3637_s18 + $0x17] sm:$0x1] }
 0x1cb   : > { %1749 = vst [vmem:[#allocation1 + $0x7] ss:$9 sm:$0xff] %v1472_v47  ;;  %v1913_v47 = vld [vmem:[%s3637_s18 + $0x18] sm:$0x1] }
 0x1d2   : > { %v3587_v52 = vld [vmem:[#allocation1] sm:$0xff] }
 0x1d3   : > { %1751 = vst [vmem:[#allocation1] ss:$9 sm:$0xff] %v1473_v49  ;;  %2780 = vmatmul.msk.f32.gmra.mxu2 %vm1787_vm1, %v3587_v52  ;;  %v1914_v49 = vld [vmem:[%s3637_s18 + $0x19] sm:$0x1]  ;;  %v1916_v52 = vld [vmem:[%s3637_s18 + $0x1b] sm:$0x1] }
 0x1d4   : > { %1752 = vst [vmem:[#allocation1 + $0x1] ss:$9 sm:$0xff] %v1474_v50 }
 0x1d5   : > { %1753 = vst [vmem:[#allocation1 + $0x2] ss:$9 sm:$0xff] %v1475_v51  ;;  %v1915_v51 = vld [vmem:[%s3637_s18 + $0x1a] sm:$0x1] }
 0x1d6   : > { %1754 = vst [vmem:[#allocation1 + $0x3] ss:$9 sm:$0xff] %v1476_v53  ;;  %v1917_v53 = vld [vmem:[%s3637_s18 + $0x1c] sm:$0x1] }
 0x1d7   : > { %1755 = vst [vmem:[#allocation1 + $0x4] ss:$9 sm:$0xff] %v1477_v54  ;;  %v1918_v54 = vld [vmem:[%s3637_s18 + $0x1d] sm:$0x1] }
 0x1d8   : > { %1756 = vst [vmem:[#allocation1 + $0x5] ss:$9 sm:$0xff] %v1478_v55  ;;  %v1919_v55 = vld [vmem:[%s3637_s18 + $0x1e] sm:$0x1] }
 0x1d9   : > { %1757 = vst [vmem:[#allocation1 + $0x6] ss:$9 sm:$0xff] %v1479_v56  ;;  %v1920_v56 = vld [vmem:[%s3637_s18 + $0x1f] sm:$0x1] }
 0x1da   : > { %1758 = vst [vmem:[#allocation1 + $0x7] ss:$9 sm:$0xff] %v1480_v58  ;;  %v1921_v58 = vld [vmem:[%s3637_s18 + $0x20] sm:$0x1] }
 0x1e1   : > { %v3597_v62 = vld [vmem:[#allocation1] sm:$0xff] }
 0x1e2   : > { %1760 = vst [vmem:[#allocation1] ss:$9 sm:$0xff] %v1481_v59  ;;  %2781 = vmatmul.msk.f32.gmra.mxu2 %vm1787_vm1, %v3597_v62  ;;  %v1922_v59 = vld [vmem:[%s3637_s18 + $0x21] sm:$0x1]  ;;  %v1924_v62 = vld [vmem:[%s3637_s18 + $0x23] sm:$0x1] }
 0x1e3   : > { %1761 = vst [vmem:[#allocation1 + $0x1] ss:$9 sm:$0xff] %v1482_v60 }
 0x1e4   : > { %1762 = vst [vmem:[#allocation1 + $0x2] ss:$9 sm:$0xff] %v1483_v61  ;;  %v1923_v61 = vld [vmem:[%s3637_s18 + $0x22] sm:$0x1] }
 0x1e5   : > { %1763 = vst [vmem:[#allocation1 + $0x3] ss:$9 sm:$0xff] %v1484_v63  ;;  %v1925_v63 = vld [vmem:[%s3637_s18 + $0x24] sm:$0x1] }
 0x1e6   : > { %1764 = vst [vmem:[#allocation1 + $0x4] ss:$9 sm:$0xff] %v1485_v0  ;;  %v1926_v0 = vld [vmem:[%s3637_s18 + $0x25] sm:$0x1] }
 0x1e7   : > { %1765 = vst [vmem:[#allocation1 + $0x5] ss:$9 sm:$0xff] %v1486_v1  ;;  %v1927_v1 = vld [vmem:[%s3637_s18 + $0x26] sm:$0x1] }
 0x1e8   : > { %1766 = vst [vmem:[#allocation1 + $0x6] ss:$9 sm:$0xff] %v1487_v3  ;;  %v1928_v3 = vld [vmem:[%s3637_s18 + $0x27] sm:$0x1] }
 0x1e9   : > { %1767 = vst [vmem:[#allocation1 + $0x7] ss:$9 sm:$0xff] %v1488_v4  ;;  %v1929_v4 = vld [vmem:[%s3637_s18 + $0x28] sm:$0x1] }
 0x1f0   : > { %v1768_v8 = vld [vmem:[#allocation1] sm:$0xff] }
 0x1f1   : > { %1769 = vst [vmem:[#allocation1] ss:$9 sm:$0xff] %v1489_v5  ;;  %2782 = vmatmul.msk.f32.gmra.mxu2 %vm1787_vm1, %v1768_v8  ;;  %v1930_v5 = vld [vmem:[%s3637_s18 + $0x29] sm:$0x1]  ;;  %v1932_v8 = vld [vmem:[%s3637_s18 + $0x2b] sm:$0x1] }
 0x1f2   : > { %1770 = vst [vmem:[#allocation1 + $0x1] ss:$9 sm:$0xff] %v1490_v6 }
 0x1f3   : > { %1771 = vst [vmem:[#allocation1 + $0x2] ss:$9 sm:$0xff] %v1491_v7  ;;  %v1931_v7 = vld [vmem:[%s3637_s18 + $0x2a] sm:$0x1] }
 0x1f4   : > { %1772 = vst [vmem:[#allocation1 + $0x3] ss:$9 sm:$0xff] %v1492_v9  ;;  %v1933_v9 = vld [vmem:[%s3637_s18 + $0x2c] sm:$0x1] }
 0x1f5   : > { %1773 = vst [vmem:[#allocation1 + $0x4] ss:$9 sm:$0xff] %v1493_v10  ;;  %v1934_v10 = vld [vmem:[%s3637_s18 + $0x2d] sm:$0x1] }
 0x1f6   : > { %1774 = vst [vmem:[#allocation1 + $0x5] ss:$9 sm:$0xff] %v1494_v13  ;;  %v1935_v13 = vld [vmem:[%s3637_s18 + $0x2e] sm:$0x1] }
 0x1f7   : > { %1775 = vst [vmem:[#allocation1 + $0x6] ss:$9 sm:$0xff] %v1495_v14  ;;  %v1936_v14 = vld [vmem:[%s3637_s18 + $0x2f] sm:$0x1] }
 0x1f8   : > { %1776 = vst [vmem:[#allocation1 + $0x7] ss:$9 sm:$0xff] %v1496_v15  ;;  %v1937_v15 = vld [vmem:[%s3637_s18 + $0x30] sm:$0x1] }
 0x1ff   : > { %v1777_v18 = vld [vmem:[#allocation1] sm:$0xff] }
 0x200   : > { %1778 = vst [vmem:[#allocation1] ss:$9 sm:$0xff] %v1497_v12  ;;  %2783 = vmatmul.msk.f32.gmra.mxu2 %vm1787_vm1, %v1777_v18  ;;  %v1938_v12 = vld [vmem:[%s3637_s18 + $0x31] sm:$0x1]  ;;  %v1940_v18 = vld [vmem:[%s3637_s18 + $0x33] sm:$0x1] }
 0x201   : > { %1779 = vst [vmem:[#allocation1 + $0x1] ss:$9 sm:$0xff] %v1498_v16 }
 0x202   : > { %1780 = vst [vmem:[#allocation1 + $0x2] ss:$9 sm:$0xff] %v1499_v17  ;;  %v1939_v17 = vld [vmem:[%s3637_s18 + $0x32] sm:$0x1] }
 0x203   : > { %1781 = vst [vmem:[#allocation1 + $0x3] ss:$9 sm:$0xff] %v1500_v19  ;;  %v1941_v19 = vld [vmem:[%s3637_s18 + $0x34] sm:$0x1] }
 0x204   : > { %1782 = vst [vmem:[#allocation1 + $0x4] ss:$9 sm:$0xff] %v1501_v20  ;;  %v1942_v20 = vld [vmem:[%s3637_s18 + $0x35] sm:$0x1] }
 0x205   : > { %1783 = vst [vmem:[#allocation1 + $0x5] ss:$9 sm:$0xff] %v1502_v21  ;;  %v1943_v21 = vld [vmem:[%s3637_s18 + $0x36] sm:$0x1] }
 0x206   : > { %1784 = vst [vmem:[#allocation1 + $0x6] ss:$9 sm:$0xff] %v1503_v22  ;;  %v1944_v22 = vld [vmem:[%s3637_s18 + $0x37] sm:$0x1] }
 0x207   : > { %1785 = vst [vmem:[#allocation1 + $0x7] ss:$9 sm:$0xff] %v1504_v23  ;;  %v1945_v23 = vld [vmem:[%s3637_s18 + $0x38] sm:$0x1] }
 0x20e   : > { %v1786_v25 = vld [vmem:[#allocation1] sm:$0xff] }
 0x20f   : > { %2145 = vst [vmem:[#allocation1] ss:$9 sm:$0xff] %v1889_v30  ;;  %2784 = vmatmul.msk.f32.gmra.mxu2 %vm1787_vm1, %v1786_v25  ;;  %v1946_v30 = vld [vmem:[%s3637_s18 + $0x39] sm:$0x1] }
 0x210   : > { %2147 = vst [vmem:[#allocation1 + $0x1] ss:$9 sm:$0xff] %v1890_v24  ;;  %v1947_v24 = vld [vmem:[%s3637_s18 + $0x3a] sm:$0x1] }
 0x211   : > { %2149 = vst [vmem:[#allocation1 + $0x2] ss:$9 sm:$0xff] %v1891_v26  ;;  %v1948_v26 = vld [vmem:[%s3637_s18 + $0x3b] sm:$0x1] }
 0x212   : > { %2151 = vst [vmem:[#allocation1 + $0x3] ss:$9 sm:$0xff] %v1892_v27  ;;  %v1949_v27 = vld [vmem:[%s3637_s18 + $0x3c] sm:$0x1] }
 0x213   : > { %2153 = vst [vmem:[#allocation1 + $0x4] ss:$9 sm:$0xff] %v1893_v39  ;;  %v1950_v39 = vld [vmem:[%s3637_s18 + $0x3d] sm:$0x1] }
 0x214   : > { %2155 = vst [vmem:[#allocation1 + $0x5] ss:$9 sm:$0xff] %v1894_v28  ;;  %v1951_v28 = vld [vmem:[%s3637_s18 + $0x3e] sm:$0x1] }
 0x215   : > { %2157 = vst [vmem:[#allocation1 + $0x6] ss:$9 sm:$0xff] %v1895_v29  ;;  %v1952_v29 = vld [vmem:[%s3637_s18 + $0x3f] sm:$0x1] }
 0x216   : > { %2159 = vst [vmem:[#allocation1 + $0x7] ss:$9 sm:$0xff] %v1896_v31  ;;  %v1953_v31 = vld [vmem:[%s3637_s18 + $0x40] sm:$0x1] }
 0x21d   : > { %v2160_v33 = vld [vmem:[#allocation1] sm:$0xff] }
 0x21e   : > { %2786 = vmatmul.msk.f32.vlgmr.msra.gmra.mxu1 %vm1787_vm1, %v2160_v33  ;;  %2161 = vst [vmem:[#allocation1] ss:$9 sm:$0xff] %v1897_v48  ;;  %v1954_v48 = vld [vmem:[%s3637_s18 + $0x41] sm:$0x1] }
 0x21f   : > { %2162 = vst [vmem:[#allocation1 + $0x1] ss:$9 sm:$0xff] %v1898_v32  ;;  %v1955_v32 = vld [vmem:[%s3637_s18 + $0x42] sm:$0x1] }
 0x220   : > { %2163 = vst [vmem:[#allocation1 + $0x2] ss:$9 sm:$0xff] %v1899_v34  ;;  %v1956_v34 = vld [vmem:[%s3637_s18 + $0x43] sm:$0x1] }
 0x221   : > { %2164 = vst [vmem:[#allocation1 + $0x3] ss:$9 sm:$0xff] %v1900_v35  ;;  %v1957_v35 = vld [vmem:[%s3637_s18 + $0x44] sm:$0x1] }
 0x222   : > { %2165 = vst [vmem:[#allocation1 + $0x4] ss:$9 sm:$0xff] %v1901_v36  ;;  %v1958_v36 = vld [vmem:[%s3637_s18 + $0x45] sm:$0x1] }
 0x223   : > { %2166 = vst [vmem:[#allocation1 + $0x5] ss:$9 sm:$0xff] %v1902_v57  ;;  %v1959_v57 = vld [vmem:[%s3637_s18 + $0x46] sm:$0x1] }
 0x224   : > { %2167 = vst [vmem:[#allocation1 + $0x6] ss:$9 sm:$0xff] %v1903_v37  ;;  %v1960_v37 = vld [vmem:[%s3637_s18 + $0x47] sm:$0x1] }
 0x225   : > { %2168 = vst [vmem:[#allocation1 + $0x7] ss:$9 sm:$0xff] %v1904_v38  ;;  %v1961_v38 = vld [vmem:[%s3637_s18 + $0x48] sm:$0x1] }
 0x22c   : > { %v2169_v41 = vld [vmem:[#allocation1] sm:$0xff] }
 0x22d   : > { %2787 = vmatmul.msk.f32.gmra.mxu1 %vm1787_vm1, %v2169_v41  ;;  %2170 = vst [vmem:[#allocation1] ss:$9 sm:$0xff] %v1905_v2  ;;  %v1962_v2 = vld [vmem:[%s3637_s18 + $0x49] sm:$0x1]  ;;  %v1963_v41 = vld [vmem:[%s3637_s18 + $0x4a] sm:$0x1] }
 0x22e   : > { %2171 = vst [vmem:[#allocation1 + $0x1] ss:$9 sm:$0xff] %v1906_v40 }
 0x22f   : > { %2172 = vst [vmem:[#allocation1 + $0x2] ss:$9 sm:$0xff] %v1907_v42  ;;  %v1964_v42 = vld [vmem:[%s3637_s18 + $0x4b] sm:$0x1] }
 0x230   : > { %2173 = vst [vmem:[#allocation1 + $0x3] ss:$9 sm:$0xff] %v1908_v43  ;;  %v1965_v43 = vld [vmem:[%s3637_s18 + $0x4c] sm:$0x1] }
 0x231   : > { %2174 = vst [vmem:[#allocation1 + $0x4] ss:$9 sm:$0xff] %v1909_v44  ;;  %v1966_v44 = vld [vmem:[%s3637_s18 + $0x4d] sm:$0x1] }
 0x232   : > { %2175 = vst [vmem:[#allocation1 + $0x5] ss:$9 sm:$0xff] %v1910_v45  ;;  %v1967_v45 = vld [vmem:[%s3637_s18 + $0x4e] sm:$0x1] }
 0x233   : > { %2176 = vst [vmem:[#allocation1 + $0x6] ss:$9 sm:$0xff] %v1911_v11  ;;  %v1968_v11 = vld [vmem:[%s3637_s18 + $0x4f] sm:$0x1] }
 0x234   : > { %2177 = vst [vmem:[#allocation1 + $0x7] ss:$9 sm:$0xff] %v1912_v46  ;;  %v1969_v46 = vld [vmem:[%s3637_s18 + $0x50] sm:$0x1] }
 0x23b   : > { %v2178_v50 = vld [vmem:[#allocation1] sm:$0xff] }
 0x23c   : > { %2788 = vmatmul.msk.f32.gmra.mxu1 %vm1787_vm1, %v2178_v50  ;;  %2179 = vst [vmem:[#allocation1] ss:$9 sm:$0xff] %v1913_v47  ;;  %v1970_v47 = vld [vmem:[%s3637_s18 + $0x51] sm:$0x1]  ;;  %v1971_v50 = vld [vmem:[%s3637_s18 + $0x52] sm:$0x1] }
 0x23d   : > { %2180 = vst [vmem:[#allocation1 + $0x1] ss:$9 sm:$0xff] %v1914_v49 }
 0x23e   : > { %2181 = vst [vmem:[#allocation1 + $0x2] ss:$9 sm:$0xff] %v1915_v51  ;;  %v1972_v51 = vld [vmem:[%s3637_s18 + $0x53] sm:$0x1] }
 0x23f   : > { %2182 = vst [vmem:[#allocation1 + $0x3] ss:$9 sm:$0xff] %v1916_v52  ;;  %v1973_v52 = vld [vmem:[%s3637_s18 + $0x54] sm:$0x1] }
 0x240   : > { %2183 = vst [vmem:[#allocation1 + $0x4] ss:$9 sm:$0xff] %v1917_v53  ;;  %v1974_v53 = vld [vmem:[%s3637_s18 + $0x55] sm:$0x1] }
 0x241   : > { %2184 = vst [vmem:[#allocation1 + $0x5] ss:$9 sm:$0xff] %v1918_v54  ;;  %v1975_v54 = vld [vmem:[%s3637_s18 + $0x56] sm:$0x1] }
 0x242   : > { %2185 = vst [vmem:[#allocation1 + $0x6] ss:$9 sm:$0xff] %v1919_v55  ;;  %v1976_v55 = vld [vmem:[%s3637_s18 + $0x57] sm:$0x1] }
 0x243   : > { %2186 = vst [vmem:[#allocation1 + $0x7] ss:$9 sm:$0xff] %v1920_v56  ;;  %v1977_v56 = vld [vmem:[%s3637_s18 + $0x58] sm:$0x1] }
 0x24a   : > { %v2187_v60 = vld [vmem:[#allocation1] sm:$0xff] }
 0x24b   : > { %2789 = vmatmul.msk.f32.gmra.mxu1 %vm1787_vm1, %v2187_v60  ;;  %2188 = vst [vmem:[#allocation1] ss:$9 sm:$0xff] %v1921_v58  ;;  %v1978_v58 = vld [vmem:[%s3637_s18 + $0x59] sm:$0x1]  ;;  %v1979_v60 = vld [vmem:[%s3637_s18 + $0x5a] sm:$0x1] }
 0x24c   : > { %2189 = vst [vmem:[#allocation1 + $0x1] ss:$9 sm:$0xff] %v1922_v59 }
 0x24d   : > { %2190 = vst [vmem:[#allocation1 + $0x2] ss:$9 sm:$0xff] %v1923_v61  ;;  %v1980_v61 = vld [vmem:[%s3637_s18 + $0x5b] sm:$0x1] }
 0x24e   : > { %2191 = vst [vmem:[#allocation1 + $0x3] ss:$9 sm:$0xff] %v1924_v62  ;;  %v1981_v62 = vld [vmem:[%s3637_s18 + $0x5c] sm:$0x1] }
 0x24f   : > { %2192 = vst [vmem:[#allocation1 + $0x4] ss:$9 sm:$0xff] %v1925_v63  ;;  %v1982_v63 = vld [vmem:[%s3637_s18 + $0x5d] sm:$0x1] }
 0x250   : > { %2193 = vst [vmem:[#allocation1 + $0x5] ss:$9 sm:$0xff] %v1926_v0  ;;  %v1983_v0 = vld [vmem:[%s3637_s18 + $0x5e] sm:$0x1] }
 0x251   : > { %2194 = vst [vmem:[#allocation1 + $0x6] ss:$9 sm:$0xff] %v1927_v1  ;;  %v1984_v1 = vld [vmem:[%s3637_s18 + $0x5f] sm:$0x1] }
 0x252   : > { %2195 = vst [vmem:[#allocation1 + $0x7] ss:$9 sm:$0xff] %v1928_v3  ;;  %v1985_v3 = vld [vmem:[%s3637_s18 + $0x60] sm:$0x1] }
 0x259   : > { %v2196_v6 = vld [vmem:[#allocation1] sm:$0xff] }
 0x25a   : > { %2790 = vmatmul.msk.f32.gmra.mxu1 %vm1787_vm1, %v2196_v6  ;;  %2197 = vst [vmem:[#allocation1] ss:$9 sm:$0xff] %v1929_v4  ;;  %v1986_v4 = vld [vmem:[%s3637_s18 + $0x61] sm:$0x1]  ;;  %v1987_v6 = vld [vmem:[%s3637_s18 + $0x62] sm:$0x1] }
 0x25b   : > { %2198 = vst [vmem:[#allocation1 + $0x1] ss:$9 sm:$0xff] %v1930_v5 }
 0x25c   : > { %2199 = vst [vmem:[#allocation1 + $0x2] ss:$9 sm:$0xff] %v1931_v7  ;;  %v1988_v7 = vld [vmem:[%s3637_s18 + $0x63] sm:$0x1] }
 0x25d   : > { %2200 = vst [vmem:[#allocation1 + $0x3] ss:$9 sm:$0xff] %v1932_v8  ;;  %v1989_v8 = vld [vmem:[%s3637_s18 + $0x64] sm:$0x1] }
 0x25e   : > { %2201 = vst [vmem:[#allocation1 + $0x4] ss:$9 sm:$0xff] %v1933_v9  ;;  %v1990_v9 = vld [vmem:[%s3637_s18 + $0x65] sm:$0x1] }
 0x25f   : > { %2202 = vst [vmem:[#allocation1 + $0x5] ss:$9 sm:$0xff] %v1934_v10  ;;  %v1991_v10 = vld [vmem:[%s3637_s18 + $0x66] sm:$0x1] }
 0x260   : > { %2203 = vst [vmem:[#allocation1 + $0x6] ss:$9 sm:$0xff] %v1935_v13  ;;  %v1992_v13 = vld [vmem:[%s3637_s18 + $0x67] sm:$0x1] }
 0x261   : > { %2204 = vst [vmem:[#allocation1 + $0x7] ss:$9 sm:$0xff] %v1936_v14  ;;  %v1993_v14 = vld [vmem:[%s3637_s18 + $0x68] sm:$0x1] }
 0x268   : > { %v2205_v16 = vld [vmem:[#allocation1] sm:$0xff] }
 0x269   : > { %2791 = vmatmul.msk.f32.gmra.mxu1 %vm1787_vm1, %v2205_v16  ;;  %2206 = vst [vmem:[#allocation1] ss:$9 sm:$0xff] %v1937_v15  ;;  %v1994_v15 = vld [vmem:[%s3637_s18 + $0x69] sm:$0x1]  ;;  %v1995_v16 = vld [vmem:[%s3637_s18 + $0x6a] sm:$0x1] }
 0x26a   : > { %2207 = vst [vmem:[#allocation1 + $0x1] ss:$9 sm:$0xff] %v1938_v12 }
 0x26b   : > { %2208 = vst [vmem:[#allocation1 + $0x2] ss:$9 sm:$0xff] %v1939_v17  ;;  %v1996_v17 = vld [vmem:[%s3637_s18 + $0x6b] sm:$0x1] }
 0x26c   : > { %2209 = vst [vmem:[#allocation1 + $0x3] ss:$9 sm:$0xff] %v1940_v18  ;;  %v1997_v18 = vld [vmem:[%s3637_s18 + $0x6c] sm:$0x1] }
 0x26d   : > { %2210 = vst [vmem:[#allocation1 + $0x4] ss:$9 sm:$0xff] %v1941_v19  ;;  %v1998_v19 = vld [vmem:[%s3637_s18 + $0x6d] sm:$0x1] }
 0x26e   : > { %2211 = vst [vmem:[#allocation1 + $0x5] ss:$9 sm:$0xff] %v1942_v20  ;;  %v1999_v20 = vld [vmem:[%s3637_s18 + $0x6e] sm:$0x1] }
 0x26f   : > { %2212 = vst [vmem:[#allocation1 + $0x6] ss:$9 sm:$0xff] %v1943_v21  ;;  %v2000_v21 = vld [vmem:[%s3637_s18 + $0x6f] sm:$0x1] }
 0x270   : > { %2213 = vst [vmem:[#allocation1 + $0x7] ss:$9 sm:$0xff] %v1944_v22  ;;  %v2001_v22 = vld [vmem:[%s3637_s18 + $0x70] sm:$0x1] }
 0x277   : > { %v2214_v25 = vld [vmem:[#allocation1] sm:$0xff] }
 0x278   : > { %2215 = vst [vmem:[#allocation1] ss:$9 sm:$0xff] %v1945_v23  ;;  %2792 = vmatmul.msk.f32.gmra.mxu1 %vm1787_vm1, %v2214_v25  ;;  %v2002_v23 = vld [vmem:[%s3637_s18 + $0x71] sm:$0x1] }
 0x279   : > { %2216 = vst [vmem:[#allocation1 + $0x1] ss:$9 sm:$0xff] %v1946_v30  ;;  %v3789_v30 = vld [vmem:[%s3981_s4] ss:$0 sm:$0xff] }
 0x27a   : > { %2217 = vst [vmem:[#allocation1 + $0x2] ss:$9 sm:$0xff] %v1947_v24 }
 0x27b   : > { %2218 = vst [vmem:[#allocation1 + $0x3] ss:$9 sm:$0xff] %v1948_v26  ;;  %v2003_v26 = vld [vmem:[%s3637_s18 + $0x72] sm:$0x1] }
 0x27c   : > { %2219 = vst [vmem:[#allocation1 + $0x4] ss:$9 sm:$0xff] %v1949_v27  ;;  %v3793_v27 = vld [vmem:[%s3782_s6] sm:$0xff] }
 0x27d   : > { %2220 = vst [vmem:[#allocation1 + $0x5] ss:$9 sm:$0xff] %v1950_v39  ;;  %v2004_v39 = vld [vmem:[%s3637_s18 + $0x73] sm:$0x1] }
 0x27e   : > { %2221 = vst [vmem:[#allocation1 + $0x6] ss:$9 sm:$0xff] %v1951_v28 }
 0x27f   : > { %2222 = vst [vmem:[#allocation1 + $0x7] ss:$9 sm:$0xff] %v1952_v29  ;;  %v2005_v29 = vld [vmem:[%s3637_s18 + $0x74] sm:$0x1] }
 0x286   : > { %v2223_v33 = vld [vmem:[#allocation1] sm:$0xff] }
 0x287   : > { %2224 = vst [vmem:[#allocation1] ss:$9 sm:$0xff] %v1953_v31  ;;  %2793 = vmatmul.msk.f32.gmra.mxu1 %vm1787_vm1, %v2223_v33  ;;  %v2006_v31 = vld [vmem:[%s3637_s18 + $0x75] sm:$0x1]  ;;  %v2008_v33 = vld [vmem:[%s3637_s18 + $0x77] sm:$0x1] }
 0x288   : > { %2225 = vst [vmem:[#allocation1 + $0x1] ss:$9 sm:$0xff] %v1954_v48 }
 0x289   : > { %2226 = vst [vmem:[#allocation1 + $0x2] ss:$9 sm:$0xff] %v1955_v32  ;;  %v2007_v32 = vld [vmem:[%s3637_s18 + $0x76] sm:$0x1] }
 0x28a   : > { %2227 = vst [vmem:[#allocation1 + $0x3] ss:$9 sm:$0xff] %v1956_v34 }
 0x28b   : > { %2228 = vst [vmem:[#allocation1 + $0x4] ss:$9 sm:$0xff] %v1957_v35 }
 0x28c   : > { %2229 = vst [vmem:[#allocation1 + $0x5] ss:$9 sm:$0xff] %v1958_v36 }
 0x28d   : > { %2230 = vst [vmem:[#allocation1 + $0x6] ss:$9 sm:$0xff] %v1959_v57  ;;  %v2009_v57 = vld [vmem:[%s3637_s18 + $0x78] sm:$0x1] }
 0x28e   : > { %2231 = vst [vmem:[#allocation1 + $0x7] ss:$9 sm:$0xff] %v1960_v37  ;;  %v2010_v37 = vld [vmem:[%s3637_s18 + $0x79] sm:$0x1] }
 0x295   : > { %v2232_v40 = vld [vmem:[#allocation1] sm:$0xff] }
 0x296   : > { %2794 = vmatmul.msk.f32.vlgmr.msra.gmra.mxu3 %vm1787_vm1, %v2232_v40  ;;  %2233 = vst [vmem:[#allocation1] ss:$9 sm:$0xff] %v1961_v38 }
 0x297   : > { %2234 = vst [vmem:[#allocation1 + $0x1] ss:$9 sm:$0xff] %v1962_v2  ;;  %v2011_v2 = vld [vmem:[%s3637_s18 + $0x7a] sm:$0x1] }
 0x298   : > { %2235 = vst [vmem:[#allocation1 + $0x2] ss:$9 sm:$0xff] %v1963_v41  ;;  %v3811_v41 = vld [vmem:[%s3782_s6 + $0x8] sm:$0xff] }
 0x299   : > { %2236 = vst [vmem:[#allocation1 + $0x3] ss:$9 sm:$0xff] %v1964_v42  ;;  %v2012_v42 = vld [vmem:[%s3637_s18 + $0x7b] sm:$0x1] }
 0x29a   : > { %2237 = vst [vmem:[#allocation1 + $0x4] ss:$9 sm:$0xff] %v1965_v43 }
 0x29b   : > { %2238 = vst [vmem:[#allocation1 + $0x5] ss:$9 sm:$0xff] %v1966_v44  ;;  %v2345_v24 = vpop.f32.mrf.mxu1  ;;  %v2013_v44 = vld [vmem:[%s3637_s18 + $0x7c] sm:$0x1] }
 0x29c   : > { %2239 = vst [vmem:[#allocation1 + $0x6] ss:$9 sm:$0xff] %v1967_v45  ;;  %v2346_v28 = vadd.f32 %v3789_v30, %v2345_v24  ;;  %v2014_v45 = vld [vmem:[%s3637_s18 + $0x7d] sm:$0x1] }
 0x29d   : > { %2240 = vst [vmem:[#allocation1 + $0x7] ss:$9 sm:$0xff] %v1968_v11 }
 0x29e   : > { %v2417_v48 = vadd.f32 %v3793_v27, %v2346_v28 }
 0x2a0   : > { %2449 = vrot.lane.b32.xlu0 %v2417_v48, %s2857_s9 }
 0x2a4   : > { %v2241_v49 = vld [vmem:[#allocation1] sm:$0xff] }
 0x2a5   : > { %2795 = vmatmul.msk.f32.gmra.mxu3 %vm1787_vm1, %v2241_v49  ;;  %2242 = vst [vmem:[#allocation1] ss:$9 sm:$0xff] %v1969_v46  ;;  %v2015_v46 = vld [vmem:[%s3637_s18 + $0x7e] sm:$0x1] }
 0x2a6   : > { %2243 = vst [vmem:[#allocation1 + $0x1] ss:$9 sm:$0xff] %v1970_v47  ;;  %v2016_v47 = vld [vmem:[%s3637_s18 + $0x7f] sm:$0x1] }
 0x2a7   : > { %2244 = vst [vmem:[#allocation1 + $0x2] ss:$9 sm:$0xff] %v1971_v50 }
 0x2a8   : > { %2245 = vst [vmem:[#allocation1 + $0x3] ss:$9 sm:$0xff] %v1972_v51 }
 0x2a9   : > { %2246 = vst [vmem:[#allocation1 + $0x4] ss:$9 sm:$0xff] %v1973_v52 }
 0x2aa   : > { %2247 = vst [vmem:[#allocation1 + $0x5] ss:$9 sm:$0xff] %v1974_v53  ;;  %v2348_v34 = vpop.f32.mrf.mxu1 }
 0x2ab   : > { %2248 = vst [vmem:[#allocation1 + $0x6] ss:$9 sm:$0xff] %v1975_v54  ;;  %v2349_v35 = vadd.f32 %v3789_v30, %v2348_v34  ;;  %v3827_v54 = vld [vmem:[%s3782_s6 + $0x10] sm:$0xff] }
 0x2ac   : > { %2249 = vst [vmem:[#allocation1 + $0x7] ss:$9 sm:$0xff] %v1976_v55 }
 0x2ad   : > { %v2418_v36 = vadd.f32 %v3793_v27, %v2349_v35 }
 0x2af   : > { %2451 = vrot.lane.b32.xlu0 %v2418_v36, %s2857_s9 }
 0x2b3   : > { %v2250_v59 = vld [vmem:[#allocation1] sm:$0xff] }
 0x2b4   : > { %2796 = vmatmul.msk.f32.gmra.mxu3 %vm1787_vm1, %v2250_v59  ;;  %2251 = vst [vmem:[#allocation1] ss:$9 sm:$0xff] %v1977_v56 }
 0x2b5   : > { %2252 = vst [vmem:[#allocation1 + $0x1] ss:$9 sm:$0xff] %v1978_v58 }
 0x2b6   : > { %2253 = vst [vmem:[#allocation1 + $0x2] ss:$9 sm:$0xff] %v1979_v60 }
 0x2b7   : > { %2254 = vst [vmem:[#allocation1 + $0x3] ss:$9 sm:$0xff] %v1980_v61 }
 0x2b8   : > { %2255 = vst [vmem:[#allocation1 + $0x4] ss:$9 sm:$0xff] %v1981_v62  ;;  %v3836_v62 = vld [vmem:[%s3782_s6 + $0x18] sm:$0xff] }
 0x2b9   : > { %2256 = vst [vmem:[#allocation1 + $0x5] ss:$9 sm:$0xff] %v1982_v63  ;;  %v2351_v40 = vpop.f32.mrf.mxu1 }
 0x2ba   : > { %2257 = vst [vmem:[#allocation1 + $0x6] ss:$9 sm:$0xff] %v1983_v0  ;;  %v2352_v43 = vadd.f32 %v3789_v30, %v2351_v40  ;;  %v3887_v40 = vld [vmem:[%s3782_s6 + $0x38] sm:$0xff] }
 0x2bb   : > { %2258 = vst [vmem:[#allocation1 + $0x7] ss:$9 sm:$0xff] %v1984_v1 }
 0x2bc   : > { %v2419_v11 = vadd.f32 %v3811_v41, %v2352_v43 }
 0x2be   : > { %2453 = vrot.lane.b32.xlu1 %v2419_v11, %s2857_s9 }
 0x2c2   : > { %v2259_v5 = vld [vmem:[#allocation1] sm:$0xff] }
 0x2c3   : > { %2797 = vmatmul.msk.f32.gmra.mxu3 %vm1787_vm1, %v2259_v5  ;;  %2260 = vst [vmem:[#allocation1] ss:$9 sm:$0xff] %v1985_v3  ;;  %v3843_v5 = vld [vmem:[%s3782_s6 + $0x20] sm:$0xff] }
 0x2c4   : > { %2261 = vst [vmem:[#allocation1 + $0x1] ss:$9 sm:$0xff] %v1986_v4 }
 0x2c5   : > { %2262 = vst [vmem:[#allocation1 + $0x2] ss:$9 sm:$0xff] %v1987_v6 }
 0x2c6   : > { %2263 = vst [vmem:[#allocation1 + $0x3] ss:$9 sm:$0xff] %v1988_v7 }
 0x2c7   : > { %2264 = vst [vmem:[#allocation1 + $0x4] ss:$9 sm:$0xff] %v1989_v8 }
 0x2c8   : > { %2265 = vst [vmem:[#allocation1 + $0x5] ss:$9 sm:$0xff] %v1990_v9  ;;  %v2354_v49 = vpop.f32.mrf.mxu1 }
 0x2c9   : > { %2266 = vst [vmem:[#allocation1 + $0x6] ss:$9 sm:$0xff] %v1991_v10  ;;  %v2355_v50 = vadd.f32 %v3789_v30, %v2354_v49 }
 0x2ca   : > { %2267 = vst [vmem:[#allocation1 + $0x7] ss:$9 sm:$0xff] %v1992_v13 }
 0x2cb   : > { %v2420_v51 = vadd.f32 %v3811_v41, %v2355_v50 }
 0x2cd   : > { %2455 = vrot.lane.b32.xlu1 %v2420_v51, %s2857_s9 }
 0x2d1   : > { %v2268_v12 = vld [vmem:[#allocation1] sm:$0xff] }
 0x2d2   : > { %2798 = vmatmul.msk.f32.gmra.mxu3 %vm1787_vm1, %v2268_v12  ;;  %2269 = vst [vmem:[#allocation1] ss:$9 sm:$0xff] %v1993_v14 }
 0x2d3   : > { %2270 = vst [vmem:[#allocation1 + $0x1] ss:$9 sm:$0xff] %v1994_v15  ;;  %v3854_v15 = vld [vmem:[%s3782_s6 + $0x28] sm:$0xff] }
 0x2d4   : > { %2271 = vst [vmem:[#allocation1 + $0x2] ss:$9 sm:$0xff] %v1995_v16 }
 0x2d5   : > { %2272 = vst [vmem:[#allocation1 + $0x3] ss:$9 sm:$0xff] %v1996_v17 }
 0x2d6   : > { %2273 = vst [vmem:[#allocation1 + $0x4] ss:$9 sm:$0xff] %v1997_v18 }
 0x2d7   : > { %2274 = vst [vmem:[#allocation1 + $0x5] ss:$9 sm:$0xff] %v1998_v19  ;;  %v2357_v53 = vpop.f32.mrf.mxu1 }
 0x2d8   : > { %2275 = vst [vmem:[#allocation1 + $0x6] ss:$9 sm:$0xff] %v1999_v20  ;;  %v2358_v55 = vadd.f32 %v3789_v30, %v2357_v53 }
 0x2d9   : > { %2276 = vst [vmem:[#allocation1 + $0x7] ss:$9 sm:$0xff] %v2000_v21  ;;  %v3863_v21 = vld [vmem:[%s3782_s6 + $0x30] sm:$0xff] }
 0x2da   : > { %v2421_v56 = vadd.f32 %v3827_v54, %v2358_v55 }
 0x2dc   : > { %2457 = vrot.lane.b32.xlu2 %v2421_v56, %s2857_s9 }
 0x2e0   : > { %v2277_v25 = vld [vmem:[#allocation1] sm:$0xff] }
 0x2e1   : > { %2799 = vmatmul.msk.f32.gmra.mxu3 %vm1787_vm1, %v2277_v25  ;;  %2278 = vst [vmem:[#allocation1] ss:$9 sm:$0xff] %v2001_v22 }
 0x2e2   : > { %2279 = vst [vmem:[#allocation1 + $0x1] ss:$9 sm:$0xff] %v2002_v23 }
 0x2e3   : > { %2280 = vst [vmem:[#allocation1 + $0x2] ss:$9 sm:$0xff] %v2003_v26 }
 0x2e4   : > { %2281 = vst [vmem:[#allocation1 + $0x3] ss:$9 sm:$0xff] %v2004_v39  ;;  %v1841_v39 = vpop.f32.mrf.mxu0 }
 0x2e5   : > { %2282 = vst [vmem:[#allocation1 + $0x4] ss:$9 sm:$0xff] %v2005_v29  ;;  %v1842_v29 = vadd.f32 %v3789_v30, %v1841_v39 }
 0x2e6   : > { %2283 = vst [vmem:[#allocation1 + $0x5] ss:$9 sm:$0xff] %v2006_v31  ;;  %v2360_v58 = vpop.f32.mrf.mxu1 }
 0x2e7   : > { %2284 = vst [vmem:[#allocation1 + $0x6] ss:$9 sm:$0xff] %v2007_v32  ;;  %v2361_v59 = vadd.f32 %v3789_v30, %v2360_v58  ;;  %v2401_v48 = vadd.f32 %v3793_v27, %v1842_v29 }
 0x2e8   : > { %2285 = vst [vmem:[#allocation1 + $0x7] ss:$9 sm:$0xff] %v2008_v33  ;;  %v1865_v33 = vpop.f32.mrf.mxu2 }
 0x2e9   : > { %v2422_v60 = vadd.f32 %v3827_v54, %v2361_v59 }
 0x2eb   : > { %2459 = vrot.lane.b32.xlu2 %v2422_v60, %s2857_s9 }
 0x2ec   : > { %v1844_v34 = vpop.f32.mrf.mxu0 }
 0x2ed   : > { %v1845_v36 = vadd.f32 %v3789_v30, %v1844_v34 }
 0x2ef   : > { %v2286_v38 = vld [vmem:[#allocation1] sm:$0xff] }
 0x2f0   : > { %2800 = vmatmul.msk.f32.gmra.mxu3 %vm1787_vm1, %v2286_v38  ;;  %2287 = vst [vmem:[#allocation1] ss:$9 sm:$0xff] %v2009_v57  ;;  %v1866_v57 = vadd.f32 %v3789_v30, %v1865_v33  ;;  %v2402_v38 = vadd.f32 %v3793_v27, %v1845_v36 }
 0x2f1   : > { %2288 = vst [vmem:[#allocation1 + $0x1] ss:$9 sm:$0xff] %v2010_v37 }
 0x2f2   : > { %2289 = vst [vmem:[#allocation1 + $0x2] ss:$9 sm:$0xff] %v2011_v2 }
 0x2f3   : > { %2290 = vst [vmem:[#allocation1 + $0x3] ss:$9 sm:$0xff] %v2012_v42 }
 0x2f4   : > { %2291 = vst [vmem:[#allocation1 + $0x4] ss:$9 sm:$0xff] %v2013_v44  ;;  %v2409_v44 = vadd.f32 %v3843_v5, %v1866_v57  ;;  %v1847_v11 = vpop.f32.mrf.mxu0 }
 0x2f5   : > { %2292 = vst [vmem:[#allocation1 + $0x5] ss:$9 sm:$0xff] %v2014_v45  ;;  %v2363_v61 = vpop.f32.mrf.mxu1 }
 0x2f6   : > { %2293 = vst [vmem:[#allocation1 + $0x6] ss:$9 sm:$0xff] %v2015_v46  ;;  %v2364_v63 = vadd.f32 %v3789_v30, %v2363_v61  ;;  %v1848_v46 = vadd.f32 %v3789_v30, %v1847_v11 }
 0x2f7   : > { %2294 = vst [vmem:[#allocation1 + $0x7] ss:$9 sm:$0xff] %v2016_v47 }
 0x2f8   : > { %v2423_v0 = vadd.f32 %v3836_v62, %v2364_v63  ;;  %v2403_v50 = vadd.f32 %v3811_v41, %v1848_v46  ;;  %v1868_v63 = vpop.f32.mrf.mxu2 }
 0x2fa   : > { %2461 = vrot.lane.b32.xlu0 %v2423_v0, %s2857_s9 }
 0x2fe   : > { %v2295_v52 = vld [vmem:[#allocation1] sm:$0xff] }
 0x2ff   : > { %2801 = vmatmul.msk.f32.gmra.mxu3 %vm1787_vm1, %v2295_v52  ;;  %v1850_v52 = vpop.f32.mrf.mxu0 }
 0x300   : > { %v1851_v53 = vadd.f32 %v3789_v30, %v1850_v52 }
 0x302   : > { %v2404_v56 = vadd.f32 %v3811_v41, %v1851_v53 }
 0x304   : > { %v2366_v1 = vpop.f32.mrf.mxu1 }
 0x305   : > { %v2367_v3 = vadd.f32 %v3789_v30, %v2366_v1 }
 0x307   : > { %v2424_v7 = vadd.f32 %v3836_v62, %v2367_v3  ;;  %v1853_v0 = vpop.f32.mrf.mxu0 }
 0x308   : > { %v1854_v1 = vadd.f32 %v3789_v30, %v1853_v0 }
 0x309   : > { %2463 = vrot.lane.b32.xlu1 %v2424_v7, %s2857_s9  ;;  %v1871_v7 = vpop.f32.mrf.mxu2 }
 0x30a   : > { %v2405_v3 = vadd.f32 %v3827_v54, %v1854_v1 }
 0x312   : > { %v2450_v31 = vpop.permute.xlu0 %2449 }
 0x313   : > { %v2498_v32 = vsel %vm2497_vm2, %v2401_v48, %v2450_v31 }
 0x314   : > { %2515 = vst.msk [vmem:[%s3878_s12] sm:$0xff] %vm2514_vm3, %v2498_v32 }
 0x319   : > { %v2369_v4 = vpop.f32.mrf.mxu3 }
 0x31a   : > { %v2370_v6 = vadd.f32 %v3789_v30, %v2369_v4  ;;  %v1856_v4 = vpop.f32.mrf.mxu0 }
 0x31c   : > { %v2425_v8 = vadd.f32 %v3843_v5, %v2370_v6  ;;  %v1857_v6 = vadd.f32 %v3789_v30, %v1856_v4 }
 0x31e   : > { %2465 = vrot.lane.b32.xlu2 %v2425_v8, %s2857_s9  ;;  %v2406_v8 = vadd.f32 %v3827_v54, %v1857_v6 }
 0x321   : > { %v2452_v37 = vpop.permute.xlu0 %2451 }
 0x322   : > { %v2499_v43 = vsel %vm2497_vm2, %v2402_v38, %v2452_v37  ;;  %v1859_v39 = vpop.f32.mrf.mxu0 }
 0x323   : > { %2516 = vst.msk [vmem:[%s3878_s12 + $0x8] sm:$0xff] %vm2514_vm3, %v2499_v43 }
 0x328   : > { %v2372_v9 = vpop.f32.mrf.mxu3 }
 0x329   : > { %v2373_v10 = vadd.f32 %v3789_v30, %v2372_v9 }
 0x32a   : > { %v1862_v48 = vpop.f32.mrf.mxu0 }
 0x32b   : > { %v2426_v13 = vadd.f32 %v3843_v5, %v2373_v10  ;;  %v1863_v32 = vadd.f32 %v3789_v30, %v1862_v48 }
 0x32d   : > { %2467 = vrot.lane.b32.xlu0 %v2426_v13, %s2857_s9  ;;  %v1869_v13 = vadd.f32 %v3789_v30, %v1868_v63  ;;  %v2408_v33 = vadd.f32 %v3836_v62, %v1863_v32 }
 0x330   : > { %v2454_v49 = vpop.permute.xlu1 %2453 }
 0x331   : > { %v2500_v51 = vsel %vm2497_vm2, %v2403_v50, %v2454_v49 }
 0x332   : > { %2517 = vst.msk [vmem:[%s3878_s12 + $0x10] sm:$0xff] %vm2514_vm3, %v2500_v51 }
 0x336   : > { %v2458_v28 = vpop.permute.xlu2 %2457 }
 0x337   : > { %v2375_v14 = vpop.f32.mrf.mxu3  ;;  %v2502_v41 = vsel %vm2497_vm2, %v2405_v3, %v2458_v28  ;;  %v1860_v28 = vadd.f32 %v3789_v30, %v1859_v39 }
 0x338   : > { %v2376_v12 = vadd.f32 %v3789_v30, %v2375_v14  ;;  %2519 = vst.msk [vmem:[%s3878_s12 + $0x20] sm:$0xff] %vm2514_vm3, %v2502_v41  ;;  %v1874_v14 = vpop.f32.mrf.mxu2 }
 0x339   : > { %v2407_v29 = vadd.f32 %v3836_v62, %v1860_v28 }
 0x33a   : > { %v2427_v16 = vadd.f32 %v3854_v15, %v2376_v12  ;;  %v2410_v12 = vadd.f32 %v3843_v5, %v1869_v13 }
 0x33c   : > { %2469 = vrot.lane.b32.xlu1 %v2427_v16, %s2857_s9  ;;  %v1875_v16 = vadd.f32 %v3789_v30, %v1874_v14 }
 0x33e   : > { %v2412_v54 = vadd.f32 %v3854_v15, %v1875_v16 }
 0x33f   : > { %v2456_v59 = vpop.permute.xlu1 %2455 }
 0x340   : > { %v2501_v60 = vsel %vm2497_vm2, %v2404_v56, %v2456_v59 }
 0x341   : > { %2518 = vst.msk [vmem:[%s3878_s12 + $0x18] sm:$0xff] %vm2514_vm3, %v2501_v60 }
 0x345   : > { %v2460_v35 = vpop.permute.xlu2 %2459 }
 0x346   : > { %v2378_v17 = vpop.f32.mrf.mxu3  ;;  %v2503_v9 = vsel %vm2497_vm2, %v2406_v8, %v2460_v35 }
 0x347   : > { %v2379_v18 = vadd.f32 %v3789_v30, %v2378_v17  ;;  %2520 = vst.msk [vmem:[%s3878_s12 + $0x28] sm:$0xff] %vm2514_vm3, %v2503_v9 }
 0x349   : > { %v2428_v19 = vadd.f32 %v3854_v15, %v2379_v18 }
 0x34b   : > { %2471 = vrot.lane.b32.xlu2 %v2428_v19, %s2857_s9 }
 0x355   : > { %v2381_v20 = vpop.f32.mrf.mxu3 }
 0x356   : > { %v2382_v22 = vadd.f32 %v3789_v30, %v2381_v20 }
 0x358   : > { %v2429_v23 = vadd.f32 %v3863_v21, %v2382_v22 }
 0x35a   : > { %2473 = vrot.lane.b32.xlu0 %v2429_v23, %s2857_s9  ;;  %v1872_v23 = vadd.f32 %v3789_v30, %v1871_v7 }
 0x35c   : > { %v2411_v5 = vadd.f32 %v3854_v15, %v1872_v23 }
 0x364   : > { %v2384_v24 = vpop.f32.mrf.mxu3 }
 0x365   : > { %v2385_v25 = vadd.f32 %v3789_v30, %v2384_v24 }
 0x367   : > { %v2430_v26 = vadd.f32 %v3863_v21, %v2385_v25 }
 0x369   : > { %2475 = vrot.lane.b32.xlu1 %v2430_v26, %s2857_s9  ;;  %v1877_v26 = vpop.f32.mrf.mxu2 }
 0x36a   : > { %v1878_v35 = vadd.f32 %v3789_v30, %v1877_v26 }
 0x36c   : > { %v2462_v10 = vpop.permute.xlu0 %2461  ;;  %v2413_v57 = vadd.f32 %v3863_v21, %v1878_v35 }
 0x36d   : > { %v2504_v31 = vsel %vm2497_vm2, %v2407_v29, %v2462_v10 }
 0x36e   : > { %2521 = vst.msk [vmem:[%s3878_s12 + $0x30] sm:$0xff] %vm2514_vm3, %v2504_v31 }
 0x371   : > { %v1880_v15 = vpop.f32.mrf.mxu2 }
 0x373   : > { %v2387_v2 = vpop.f32.mrf.mxu3 }
 0x374   : > { %v2388_v42 = vadd.f32 %v3789_v30, %v2387_v2 }
 0x376   : > { %v2431_v45 = vadd.f32 %v3887_v40, %v2388_v42 }
 0x378   : > { %2477 = vrot.lane.b32.xlu2 %v2431_v45, %s2857_s9  ;;  %v2466_v27 = vpop.permute.xlu2 %2465 }
 0x379   : > { %v2506_v47 = vsel %vm2497_vm2, %v2409_v44, %v2466_v27  ;;  %v1883_v36 = vpop.f32.mrf.mxu2  ;;  %v1881_v44 = vadd.f32 %v3789_v30, %v1880_v15 }
 0x37a   : > { %2523 = vst.msk [vmem:[%s3878_s12 + $0x40] sm:$0xff] %vm2514_vm3, %v2506_v47  ;;  %v1884_v37 = vadd.f32 %v3789_v30, %v1883_v36 }
 0x37b   : > { %v2464_v19 = vpop.permute.xlu1 %2463  ;;  %v2414_v45 = vadd.f32 %v3863_v21, %v1881_v44 }
 0x37c   : > { %v2505_v34 = vsel %vm2497_vm2, %v2408_v33, %v2464_v19  ;;  %v2415_v62 = vadd.f32 %v3887_v40, %v1884_v37 }
 0x37d   : > { %2522 = vst.msk [vmem:[%s3878_s12 + $0x38] sm:$0xff] %vm2514_vm3, %v2505_v34 }
 0x381   : > { %v1886_v27 = vpop.f32.mrf.mxu2 }
 0x382   : > { %v2390_v55 = vpop.f32.mrf.mxu3  ;;  %v1887_v47 = vadd.f32 %v3789_v30, %v1886_v27 }
 0x383   : > { %v2391_v58 = vadd.f32 %v3789_v30, %v2390_v55 }
 0x384   : > { %v2416_v49 = vadd.f32 %v3887_v40, %v1887_v47 }
 0x385   : > { %v2432_v61 = vadd.f32 %v3887_v40, %v2391_v58 }
 0x387   : > { %2479 = vrot.lane.b32.xlu0 %v2432_v61, %s2857_s9 }
 0x39f   : > { %v2468_v17 = vpop.permute.xlu0 %2467 }
 0x3a0   : > { %v2507_v18 = vsel %vm2497_vm2, %v2410_v12, %v2468_v17 }
 0x3a1   : > { %2524 = vst.msk [vmem:[%s3878_s12 + $0x48] sm:$0xff] %vm2514_vm3, %v2507_v18 }
 0x3a5   : > { %v2472_v20 = vpop.permute.xlu2 %2471 }
 0x3a6   : > { %v2509_v22 = vsel %vm2497_vm2, %v2412_v54, %v2472_v20 }
 0x3a7   : > { %2526 = vst.msk [vmem:[%s3878_s12 + $0x58] sm:$0xff] %vm2514_vm3, %v2509_v22 }
 0x3ae   : > { %v2470_v24 = vpop.permute.xlu1 %2469 }
 0x3af   : > { %v2508_v25 = vsel %vm2497_vm2, %v2411_v5, %v2470_v24 }
 0x3b0   : > { %2525 = vst.msk [vmem:[%s3878_s12 + $0x50] sm:$0xff] %vm2514_vm3, %v2508_v25 }
 0x3cc   : > { %v2474_v38 = vpop.permute.xlu0 %2473 }
 0x3cd   : > { %v2510_v2 = vsel %vm2497_vm2, %v2413_v57, %v2474_v38 }
 0x3ce   : > { %2527 = vst.msk [vmem:[%s3878_s12 + $0x60] sm:$0xff] %vm2514_vm3, %v2510_v2 }
 0x3d2   : > { %v2478_v42 = vpop.permute.xlu2 %2477 }
 0x3d3   : > { %v2512_v43 = vsel %vm2497_vm2, %v2415_v62, %v2478_v42 }
 0x3d4   : > { %2529 = vst.msk [vmem:[%s3878_s12 + $0x70] sm:$0xff] %vm2514_vm3, %v2512_v43 }
 0x3db   : > { %v2476_v11 = vpop.permute.xlu1 %2475 }
 0x3dc   : > { %v2511_v46 = vsel %vm2497_vm2, %v2414_v45, %v2476_v11 }
 0x3dd   : > { %2528 = vst.msk [vmem:[%s3878_s12 + $0x68] sm:$0xff] %vm2514_vm3, %v2511_v46 }
 0x3f9   : > { %v2480_v50 = vpop.permute.xlu0 %2479 }
 0x3fa   : > { %v2513_v51 = vsel %vm2497_vm2, %v2416_v49, %v2480_v50 }
 0x3fb   : > { %2530 = vst.msk [vmem:[%s3878_s12 + $0x78] sm:$0xff] %vm2514_vm3, %v2513_v51 }
 0x3fc PF: > { %p12_p10 = scmp.ge.s32.totalorder %s2905_s22, 4   ;;  %s3984_s18 = smov %s2851_s19 }
 0x3fd   : > { %s3985_s19 = smov %s2914_s25  ;;  %s3986_s20 = smov %s2905_s22 }
 0x3fe   :  { %14 = sbr.rel (!%p12_p10) target bundleno = 2 (0x2), region = 182 }

</bundles_post_ra>
